<compile_context>
chip_gen: v7x
topology: tpu7x:2x2x1
jax: 0.10.0
libtpu: 0.0.40
codegen_flags: <defaults>
</compile_context>

<pallas_src>
import functools

import numpy as np
import jax
import jax.numpy as jnp
from jax.experimental import pallas as pl
from jax.experimental.pallas import tpu as pltpu


# ----------------------------------------------------------------------------
# Pallas kernels
# ----------------------------------------------------------------------------

def _emb_mlp_kernel(e_ref, w0T_ref, b0_ref, w1T_ref, b1_ref, o_ref):
    """silu(silu(e @ W0^T + b0) @ W1^T + b1) -- whole batch in one VMEM block."""
    h = jnp.dot(e_ref[...], w0T_ref[...],
                preferred_element_type=jnp.float32) + b0_ref[...]
    h = h * jax.nn.sigmoid(h)
    h = jnp.dot(h, w1T_ref[...],
                preferred_element_type=jnp.float32) + b1_ref[...]
    o_ref[...] = h * jax.nn.sigmoid(h)


def _linear_block_kernel(x_ref, emb_ref, wxT_ref, weT_ref, lb_ref,
                         A_ref, gnw_ref, gnb_ref,
                         wqT_ref, bq_ref, wkT_ref, bk_ref, wvT_ref, bv_ref,
                         wpT_ref, bp_ref, o_ref, *,
                         inv_group_denom, eps, attn_scale):
    """One fully fused LinearBlock:
         h   = relu(x @ Wx^T + emb @ We^T + b)      (TimeEmbedLinear, emb broadcast over T)
         hn  = GroupNorm_T(h)                       (channels = time steps)
         q,k,v = hn @ Wq/Wk/Wv^T + b                (qkv linear, pre-split on the host)
         a   = softmax(q k^T / sqrt(C)) @ v         (single head)
         out = a @ Wp^T + bp + hn                   (proj + residual)
    All batches are processed in one invocation (B is tiny -> static unrolled loop)."""
    # emb contribution (+ linear bias) for all batches at once: (B, Cemb) @ (Cemb, C)
    embc = jnp.dot(emb_ref[...], weT_ref[...],
                   preferred_element_type=jnp.float32) + lb_ref[...]
    B = x_ref.shape[0]
    for b in range(B):                                   # static unroll (B == 2)
        xb = x_ref[b]                                    # (T, Cin)
        h = jnp.dot(xb, wxT_ref[...], preferred_element_type=jnp.float32)
        h = h + embc[b:b + 1, :]                         # broadcast over the T rows
        h = jnp.maximum(h, 0.0)                          # ReLU

        # --- GroupNorm over time-channels: reduce rows first, aggregate with tiny A
        s1 = jnp.sum(h, axis=1, keepdims=True)                               # (T, 1)
        g1 = jnp.dot(A_ref[...], s1, preferred_element_type=jnp.float32)     # group sums
        mu = g1 * inv_group_denom
        c = h - mu                                                           # centered
        s2 = jnp.sum(c * c, axis=1, keepdims=True)
        g2 = jnp.dot(A_ref[...], s2, preferred_element_type=jnp.float32)
        inv = jax.lax.rsqrt(g2 * inv_group_denom + eps)
        hn = c * inv * gnw_ref[...] + gnb_ref[...]                           # (T, C)

        # --- single-head attention over the T axis (all in VMEM, no qkv round trips)
        q = jnp.dot(hn, wqT_ref[...], preferred_element_type=jnp.float32) + bq_ref[...]
        k = jnp.dot(hn, wkT_ref[...], preferred_element_type=jnp.float32) + bk_ref[...]
        v = jnp.dot(hn, wvT_ref[...], preferred_element_type=jnp.float32) + bv_ref[...]
        logits = jax.lax.dot_general(q, k, (((1,), (1,)), ((), ())),
                                     preferred_element_type=jnp.float32) * attn_scale
        m = jnp.max(logits, axis=-1, keepdims=True)
        e = jnp.exp(logits - m)
        w = e / jnp.sum(e, axis=-1, keepdims=True)
        a = jnp.dot(w, v, preferred_element_type=jnp.float32)                # (T, C)

        o_ref[b] = (jnp.dot(a, wpT_ref[...], preferred_element_type=jnp.float32)
                    + bp_ref[...] + hn)


def _linear_bias_kernel(x_ref, wT_ref, b_ref, o_ref):
    o_ref[...] = jnp.dot(x_ref[...], wT_ref[...],
                         preferred_element_type=jnp.float32) + b_ref[...]


# ----------------------------------------------------------------------------
# Pallas wrappers
# ----------------------------------------------------------------------------

def pallas_emb_mlp(emb0, map0_w, map0_b, map1_w, map1_b):
    """Fused map_layer0 -> silu -> map_layer1 -> silu.  One launch, one grid step."""
    B = emb0.shape[0]
    E = map0_w.shape[0]
    return pl.pallas_call(
        _emb_mlp_kernel,
        out_shape=jax.ShapeDtypeStruct((B, E), jnp.float32),
    )(emb0, map0_w.T, map0_b.reshape(1, E), map1_w.T, map1_b.reshape(1, E))


def pallas_linear_block(x, emb, LP, num_groups, eps):
    """One LinearBlock == one pallas_call (whole-array VMEM blocks, no grid)."""
    B, T, Cin = x.shape
    Cout = LP["lin_w"].shape[0]
    # Host-side pre-splits / pre-transposes (tiny, one-time) so all in-kernel matmuls
    # are dense (M,K)@(K,N) and q/k/v need no strided slicing of the qkv slab.
    wxT = LP["lin_w"][:, :Cin].T             # (Cin,  Cout)
    weT = LP["lin_w"][:, Cin:].T             # (Cemb, Cout)
    gidx = jnp.arange(T) // (T // num_groups)
    A = (gidx[:, None] == gidx[None, :]).astype(jnp.float32)    # (T, T) membership
    wqT = LP["qkv_w"][:Cout, :].T
    wkT = LP["qkv_w"][Cout:2 * Cout, :].T
    wvT = LP["qkv_w"][2 * Cout:, :].T
    bq = LP["qkv_b"][:Cout].reshape(1, Cout)
    bk = LP["qkv_b"][Cout:2 * Cout].reshape(1, Cout)
    bv = LP["qkv_b"][2 * Cout:].reshape(1, Cout)
    kernel = functools.partial(
        _linear_block_kernel,
        inv_group_denom=float(1.0 / ((T // num_groups) * Cout)),
        eps=float(eps),
        attn_scale=float(1.0 / np.sqrt(Cout)))
    return pl.pallas_call(
        kernel,
        out_shape=jax.ShapeDtypeStruct((B, T, Cout), jnp.float32),
    )(x, emb, wxT, weT, LP["lin_b"].reshape(1, Cout), A,
      LP["gn_w"].reshape(T, 1), LP["gn_b"].reshape(T, 1),
      wqT, bq, wkT, bk, wvT, bv,
      LP["proj_w"].T, LP["proj_b"].reshape(1, Cout))


def pallas_linear(x2d, w, b, block_m=128):
    """x:(M,K) @ w^T + b with a tail-safe M tiling (pads M up to a tile multiple
    instead of silently making one giant block)."""
    M, K = x2d.shape
    N = w.shape[0]
    TM = block_m if M >= block_m else M
    Mpad = pl.cdiv(M, TM) * TM
    xp = x2d if Mpad == M else jnp.pad(x2d, ((0, Mpad - M), (0, 0)))
    out = pl.pallas_call(
        _linear_bias_kernel,
        grid=(Mpad // TM,),
        in_specs=[pl.BlockSpec((TM, K), lambda i: (i, 0)),
                  pl.BlockSpec((K, N), lambda i: (0, 0)),
                  pl.BlockSpec((1, N), lambda i: (0, 0))],
        out_specs=pl.BlockSpec((TM, N), lambda i: (i, 0)),
        out_shape=jax.ShapeDtypeStruct((Mpad, N), jnp.float32),
        compiler_params=pltpu.CompilerParams(dimension_semantics=("parallel",)),
    )(xp, w.T, b.reshape(1, N))
    return out[:M]


# ----------------------------------------------------------------------------
# Embedding glue (trig on a (B, 16) array) + full forward
# ----------------------------------------------------------------------------

def positional_embedding_flipped(noise_labels, num_channels, max_positions):
    """PositionalEmbedding(endpoint=True) followed by the cos/sin half-swap
    (emb.reshape(B,2,-1).flip(1)) done in MLP_RL.forward -> [sin | cos]."""
    F = num_channels // 2
    freqs = jnp.arange(F, dtype=jnp.float32) / (F - 1)
    freqs = (1.0 / max_positions) ** freqs
    phase = noise_labels[:, None] * freqs[None, :]
    return jnp.concatenate([jnp.sin(phase), jnp.cos(phase)], axis=1)


def mlp_rl_forward(x, noise_labels, P, cfg):
    """MLP_RL.forward (eval mode, label_dim=augment_dim=0, num_heads=1)."""
    B, T, _ = x.shape
    emb0 = positional_embedding_flipped(noise_labels, cfg["noise_channels"],
                                        cfg["max_positions"])
    emb = pallas_emb_mlp(emb0, P["map0_w"], P["map0_b"], P["map1_w"], P["map1_b"])
    aux = x
    for LP in P["blocks"]:
        aux = pallas_linear_block(aux, emb, LP, cfg["num_groups"], cfg["eps"])
    # out = Sequential(Dropout(p), Linear): Dropout is identity in eval mode.
    # TODO(synk): training-mode dropout not implemented.
    out = pallas_linear(aux.reshape(B * T, -1), P["out_w"], P["out_b"])
    return out.reshape(B, T, -1)


# ----------------------------------------------------------------------------
# Pure-JAX reference (mirrors the PyTorch module op-by-op)
# ----------------------------------------------------------------------------

def _ref_linear_block(x, emb, LP, num_groups, eps):
    B, T, _ = x.shape
    Cout = LP["lin_w"].shape[0]
    local = jnp.repeat(emb[:, None, :], T, axis=1)
    xe = jnp.concatenate([x, local], axis=-1).reshape(B * T, -1)
    h = jax.nn.relu(xe @ LP["lin_w"].T + LP["lin_b"]).reshape(B, T, Cout)
    G = num_groups
    hr = h.reshape(B, G, (T // G) * Cout)
    mu = hr.mean(axis=-1, keepdims=True)
    var = ((hr - mu) ** 2).mean(axis=-1, keepdims=True)
    hn = ((hr - mu) / jnp.sqrt(var + eps)).reshape(B, T, Cout)
    hn = hn * LP["gn_w"].reshape(1, T, 1) + LP["gn_b"].reshape(1, T, 1)
    qkv = hn.reshape(B * T, Cout) @ LP["qkv_w"].T + LP["qkv_b"]
    qkv = qkv.reshape(B, T, 3, Cout)                  # == reshape(B*H, T//H, 3, -1), H=1
    q, k, v = qkv[:, :, 0, :], qkv[:, :, 1, :], qkv[:, :, 2, :]
    w = jax.nn.softmax(jnp.einsum("bqc,bkc->bqk", q, k) / np.sqrt(Cout), axis=-1)
    a = jnp.einsum("bqk,bkc->bqc", w, v)
    out = a.reshape(B * T, Cout) @ LP["proj_w"].T + LP["proj_b"]
    return out.reshape(B, T, Cout) + hn


def reference_forward(x, noise_labels, P, cfg):
    B, T, _ = x.shape
    F = cfg["noise_channels"] // 2
    freqs = jnp.arange(F, dtype=jnp.float32) / (F - 1)
    freqs = (1.0 / cfg["max_positions"]) ** freqs
    ph = noise_labels[:, None] * freqs[None, :]
    e = jnp.concatenate([jnp.cos(ph), jnp.sin(ph)], axis=1)
    e = e.reshape(B, 2, F)[:, ::-1, :].reshape(B, 2 * F)       # the .flip(1)
    emb = jax.nn.silu(e @ P["map0_w"].T + P["map0_b"])
    emb = jax.nn.silu(emb @ P["map1_w"].T + P["map1_b"])
    aux = x
    for LP in P["blocks"]:
        aux = _ref_linear_block(aux, emb, LP, cfg["num_groups"], cfg["eps"])
    out = aux.reshape(B * T, -1) @ P["out_w"].T + P["out_b"]
    return out.reshape(B, T, -1)


# ----------------------------------------------------------------------------
# Deterministic synthetic parameters (xavier-ish scale; nonzero everywhere so
# every kernel path does real work -- this is a synthetic test, not a checkpoint)
# ----------------------------------------------------------------------------

def make_params(key, cfg):
    D, T = cfg["data_dim"], cfg["T"]
    E, NC = cfg["emb_channels"], cfg["noise_channels"]
    hidden = cfg["hidden_dims"]
    it = iter(jax.random.split(key, 8 + 8 * len(hidden)))

    def xavier(shape, fan_in, fan_out):
        return np.sqrt(2.0 / (fan_in + fan_out)) * jax.random.normal(
            next(it), shape, jnp.float32)

    def small(shape):
        return 0.05 * jax.random.normal(next(it), shape, jnp.float32)

    P = {
        "map0_w": xavier((E, NC), NC, E), "map0_b": small((E,)),
        "map1_w": xavier((E, E), E, E),   "map1_b": small((E,)),
        "out_w": xavier((D, hidden[-1]), hidden[-1], D), "out_b": small((D,)),
        "blocks": [],
    }
    in_dim = D
    for h in hidden:
        P["blocks"].append(dict(
            lin_w=xavier((h, in_dim + E), in_dim + E, h), lin_b=small((h,)),
            gn_w=1.0 + 0.1 * jax.random.normal(next(it), (T,), jnp.float32),
            gn_b=small((T,)),
            # NOTE: the real module inits qkv with sqrt(0.2) gain and proj with 1e-5;
            # plain nonzero weights are used here so attention/proj do real work.
            qkv_w=xavier((3 * h, h), h, 3 * h), qkv_b=small((3 * h,)),
            proj_w=xavier((h, h), h, h),        proj_b=small((h,)),
        ))
        in_dim = h
    return P


# ----------------------------------------------------------------------------

if __name__ == "__main__":
    cfg = dict(
        data_dim=4,
        T=8,                      # max_length_of_trajectory == trajectory length
        hidden_dims=(32, 32),
        noise_channels=32,        # hidden_dims[0] * channel_mult_noise (=1)
        emb_channels=128,         # hidden_dims[0] * channel_mult_emb   (=4)
        num_heads=1,
        eps=1e-6,
        max_positions=10000.0,
    )
    # GroupNorm(num_channels=T, num_groups=8, min_channels_per_group=4) -> min(8, T//4)
    cfg["num_groups"] = min(8, cfg["T"] // 4)   # == 2

    key = jax.random.PRNGKey(0)
    kx, kn, kp = jax.random.split(key, 3)
    B = 2
    x = jax.random.normal(kx, (B, cfg["T"], cfg["data_dim"]), jnp.float32)
    noise_labels = jax.random.uniform(kn, (B,), jnp.float32, 0.0, 10.0)
    P = make_params(kp, cfg)

    fwd = jax.jit(functools.partial(mlp_rl_forward, cfg=cfg))
    out = jax.block_until_ready(fwd(x, noise_labels, P))

    ref = reference_forward(x, noise_labels, P, cfg)
    np.testing.assert_allclose(np.asarray(out), np.asarray(ref),
                               rtol=2e-3, atol=2e-3)
    print("KERNEL_OK")
</pallas_src>

<mosaic_0001>
module attributes {stable_mosaic.version = 11 : i64} {
  func.func @_emb_mlp_kernel(%arg0: memref<2x32xf32, #tpu.memory_space<vmem>>, %arg1: memref<32x128xf32, #tpu.memory_space<vmem>>, %arg2: memref<1x128xf32, #tpu.memory_space<vmem>>, %arg3: memref<128x128xf32, #tpu.memory_space<vmem>>, %arg4: memref<1x128xf32, #tpu.memory_space<vmem>>, %arg5: memref<2x128xf32, #tpu.memory_space<vmem>>) attributes {dimension_semantics = [], scalar_prefetch = 0 : i64, scratch_operands = 0 : i64, tpu.core_type = #tpu.core_type<tc>} {
    %c0 = arith.constant 0 : index
    %c0_0 = arith.constant 0 : index
    %0 = vector.load %arg0[%c0, %c0_0] : memref<2x32xf32, #tpu.memory_space<vmem>>, vector<2x32xf32>
    %c0_1 = arith.constant 0 : index
    %c0_2 = arith.constant 0 : index
    %1 = vector.load %arg1[%c0_1, %c0_2] : memref<32x128xf32, #tpu.memory_space<vmem>>, vector<32x128xf32>
    %cst = arith.constant dense<0.000000e+00> : vector<2x128xf32>
    %2 = tpu.matmul %0, %1, %cst {dimension_numbers = #tpu.dot_dimension_numbers<[1], [0], [0], [1], [0, 0, 1, 1], [], []>} : vector<2x32xf32>, vector<32x128xf32>, vector<2x128xf32> -> vector<2x128xf32>
    %c0_3 = arith.constant 0 : index
    %c0_4 = arith.constant 0 : index
    %3 = vector.load %arg2[%c0_3, %c0_4] : memref<1x128xf32, #tpu.memory_space<vmem>>, vector<1x128xf32>
    %4 = vector.broadcast %3 : vector<1x128xf32> to vector<2x128xf32>
    %5 = arith.addf %2, %4 : vector<2x128xf32>
    %6 = arith.negf %5 : vector<2x128xf32>
    %7 = math.exp %6 : vector<2x128xf32>
    %cst_5 = arith.constant 1.000000e+00 : f32
    %8 = vector.broadcast %cst_5 : f32 to vector<2x128xf32>
    %9 = arith.addf %8, %7 : vector<2x128xf32>
    %10 = arith.divf %8, %9 : vector<2x128xf32>
    %11 = arith.mulf %5, %10 : vector<2x128xf32>
    %c0_6 = arith.constant 0 : index
    %c0_7 = arith.constant 0 : index
    %12 = vector.load %arg3[%c0_6, %c0_7] : memref<128x128xf32, #tpu.memory_space<vmem>>, vector<128x128xf32>
    %cst_8 = arith.constant dense<0.000000e+00> : vector<2x128xf32>
    %13 = tpu.matmul %11, %12, %cst_8 {dimension_numbers = #tpu.dot_dimension_numbers<[1], [0], [0], [1], [0, 0, 1, 1], [], []>} : vector<2x128xf32>, vector<128x128xf32>, vector<2x128xf32> -> vector<2x128xf32>
    %c0_9 = arith.constant 0 : index
    %c0_10 = arith.constant 0 : index
    %14 = vector.load %arg4[%c0_9, %c0_10] : memref<1x128xf32, #tpu.memory_space<vmem>>, vector<1x128xf32>
    %15 = vector.broadcast %14 : vector<1x128xf32> to vector<2x128xf32>
    %16 = arith.addf %13, %15 : vector<2x128xf32>
    %17 = arith.negf %16 : vector<2x128xf32>
    %18 = math.exp %17 : vector<2x128xf32>
    %cst_11 = arith.constant 1.000000e+00 : f32
    %19 = vector.broadcast %cst_11 : f32 to vector<2x128xf32>
    %20 = arith.addf %19, %18 : vector<2x128xf32>
    %21 = arith.divf %19, %20 : vector<2x128xf32>
    %22 = arith.mulf %16, %21 : vector<2x128xf32>
    %c0_12 = arith.constant 0 : index
    %c0_13 = arith.constant 0 : index
    %23 = vector.load %arg5[%c0_12, %c0_13] : memref<2x128xf32, #tpu.memory_space<vmem>>, vector<2x128xf32>
    tpu.vector_store %arg5[%c0_12, %c0_13], %22 {strides = array<i32>} : memref<2x128xf32, #tpu.memory_space<vmem>>, vector<2x128xf32>,
    return
  }
}

module attributes {stable_mosaic.version = 11 : i64} {
  func.func @_linear_block_kernel(%arg0: memref<2x8x32xf32, #tpu.memory_space<vmem>>, %arg1: memref<2x128xf32, #tpu.memory_space<vmem>>, %arg2: memref<32x32xf32, #tpu.memory_space<vmem>>, %arg3: memref<128x32xf32, #tpu.memory_space<vmem>>, %arg4: memref<1x32xf32, #tpu.memory_space<vmem>>, %arg5: memref<8x8xf32, #tpu.memory_space<vmem>>, %arg6: memref<8x1xf32, #tpu.memory_space<vmem>>, %arg7: memref<8x1xf32, #tpu.memory_space<vmem>>, %arg8: memref<32x32xf32, #tpu.memory_space<vmem>>, %arg9: memref<1x32xf32, #tpu.memory_space<vmem>>, %arg10: memref<32x32xf32, #tpu.memory_space<vmem>>, %arg11: memref<1x32xf32, #tpu.memory_space<vmem>>, %arg12: memref<32x32xf32, #tpu.memory_space<vmem>>, %arg13: memref<1x32xf32, #tpu.memory_space<vmem>>, %arg14: memref<32x32xf32, #tpu.memory_space<vmem>>, %arg15: memref<1x32xf32, #tpu.memory_space<vmem>>, %arg16: memref<2x8x32xf32, #tpu.memory_space<vmem>>) attributes {dimension_semantics = [], scalar_prefetch = 0 : i64, scratch_operands = 0 : i64, tpu.core_type = #tpu.core_type<tc>} {
    %c0 = arith.constant 0 : index
    %c0_0 = arith.constant 0 : index
    %0 = vector.load %arg1[%c0, %c0_0] : memref<2x128xf32, #tpu.memory_space<vmem>>, vector<2x128xf32>
    %c0_1 = arith.constant 0 : index
    %c0_2 = arith.constant 0 : index
    %1 = vector.load %arg3[%c0_1, %c0_2] : memref<128x32xf32, #tpu.memory_space<vmem>>, vector<128x32xf32>
    %cst = arith.constant dense<0.000000e+00> : vector<2x32xf32>
    %2 = tpu.matmul %0, %1, %cst {dimension_numbers = #tpu.dot_dimension_numbers<[1], [0], [0], [1], [0, 0, 1, 1], [], []>} : vector<2x128xf32>, vector<128x32xf32>, vector<2x32xf32> -> vector<2x32xf32>
    %c0_3 = arith.constant 0 : index
    %c0_4 = arith.constant 0 : index
    %3 = vector.load %arg4[%c0_3, %c0_4] : memref<1x32xf32, #tpu.memory_space<vmem>>, vector<1x32xf32>
    %4 = vector.broadcast %3 : vector<1x32xf32> to vector<2x32xf32>
    %5 = arith.addf %2, %4 : vector<2x32xf32>
    %c0_5 = arith.constant 0 : index
    %c0_6 = arith.constant 0 : index
    %c0_7 = arith.constant 0 : index
    %6 = vector.load %arg0[%c0_5, %c0_6, %c0_7] : memref<2x8x32xf32, #tpu.memory_space<vmem>>, vector<1x8x32xf32>
    %7 = vector.shape_cast %6 : vector<1x8x32xf32> to vector<8x32xf32>
    %c0_8 = arith.constant 0 : index
    %c0_9 = arith.constant 0 : index
    %8 = vector.load %arg2[%c0_8, %c0_9] : memref<32x32xf32, #tpu.memory_space<vmem>>, vector<32x32xf32>
    %cst_10 = arith.constant dense<0.000000e+00> : vector<8x32xf32>
    %9 = tpu.matmul %7, %8, %cst_10 {dimension_numbers = #tpu.dot_dimension_numbers<[1], [0], [0], [1], [0, 0, 1, 1], [], []>} : vector<8x32xf32>, vector<32x32xf32>, vector<8x32xf32> -> vector<8x32xf32>
    %10 = vector.extract_strided_slice %5 {offsets = [0, 0], sizes = [1, 32], strides = [1, 1]} : vector<2x32xf32> to vector<1x32xf32>
    %11 = vector.broadcast %10 : vector<1x32xf32> to vector<8x32xf32>
    %12 = arith.addf %9, %11 : vector<8x32xf32>
    %cst_11 = arith.constant 0.000000e+00 : f32
    %13 = vector.broadcast %cst_11 : f32 to vector<8x32xf32>
    %14 = arith.maximumf %12, %13 : vector<8x32xf32>
    %cst_12 = arith.constant dense<0.000000e+00> : vector<8xf32>
    %15 = vector.multi_reduction <add>, %14, %cst_12 [1] : vector<8x32xf32> to vector<8xf32>
    %16 = vector.shape_cast %15 : vector<8xf32> to vector<8x1xf32>
    %c0_13 = arith.constant 0 : index
    %c0_14 = arith.constant 0 : index
    %17 = vector.load %arg5[%c0_13, %c0_14] : memref<8x8xf32, #tpu.memory_space<vmem>>, vector<8x8xf32>
    %cst_15 = arith.constant dense<0.000000e+00> : vector<8x1xf32>
    %18 = tpu.matmul %17, %16, %cst_15 {dimension_numbers = #tpu.dot_dimension_numbers<[1], [0], [0], [1], [0, 0, 1, 1], [], []>} : vector<8x8xf32>, vector<8x1xf32>, vector<8x1xf32> -> vector<8x1xf32>
    %cst_16 = arith.constant 7.812500e-03 : f32
    %19 = vector.broadcast %cst_16 : f32 to vector<8x1xf32>
    %20 = arith.mulf %18, %19 : vector<8x1xf32>
    %21 = vector.broadcast %20 : vector<8x1xf32> to vector<8x32xf32>
    %22 = arith.subf %14, %21 : vector<8x32xf32>
    %23 = arith.mulf %22, %22 : vector<8x32xf32>
    %cst_17 = arith.constant dense<0.000000e+00> : vector<8xf32>
    %24 = vector.multi_reduction <add>, %23, %cst_17 [1] : vector<8x32xf32> to vector<8xf32>
    %25 = vector.shape_cast %24 : vector<8xf32> to vector<8x1xf32>
    %c0_18 = arith.constant 0 : index
    %c0_19 = arith.constant 0 : index
    %26 = vector.load %arg5[%c0_18, %c0_19] : memref<8x8xf32, #tpu.memory_space<vmem>>, vector<8x8xf32>
    %cst_20 = arith.constant dense<0.000000e+00> : vector<8x1xf32>
    %27 = tpu.matmul %26, %25, %cst_20 {dimension_numbers = #tpu.dot_dimension_numbers<[1], [0], [0], [1], [0, 0, 1, 1], [], []>} : vector<8x8xf32>, vector<8x1xf32>, vector<8x1xf32> -> vector<8x1xf32>
    %cst_21 = arith.constant 7.812500e-03 : f32
    %28 = vector.broadcast %cst_21 : f32 to vector<8x1xf32>
    %29 = arith.mulf %27, %28 : vector<8x1xf32>
    %cst_22 = arith.constant 9.99999997E-7 : f32
    %30 = vector.broadcast %cst_22 : f32 to vector<8x1xf32>
    %31 = arith.addf %29, %30 : vector<8x1xf32>
    %32 = math.rsqrt %31 : vector<8x1xf32>
    %33 = vector.broadcast %32 : vector<8x1xf32> to vector<8x32xf32>
    %34 = arith.mulf %22, %33 : vector<8x32xf32>
    %c0_23 = arith.constant 0 : index
    %c0_24 = arith.constant 0 : index
    %35 = vector.load %arg6[%c0_23, %c0_24] : memref<8x1xf32, #tpu.memory_space<vmem>>, vector<8x1xf32>
    %36 = vector.broadcast %35 : vector<8x1xf32> to vector<8x32xf32>
    %37 = arith.mulf %34, %36 : vector<8x32xf32>
    %c0_25 = arith.constant 0 : index
    %c0_26 = arith.constant 0 : index
    %38 = vector.load %arg7[%c0_25, %c0_26] : memref<8x1xf32, #tpu.memory_space<vmem>>, vector<8x1xf32>
    %39 = vector.broadcast %38 : vector<8x1xf32> to vector<8x32xf32>
    %40 = arith.addf %37, %39 : vector<8x32xf32>
    %c0_27 = arith.constant 0 : index
    %c0_28 = arith.constant 0 : index
    %41 = vector.load %arg8[%c0_27, %c0_28] : memref<32x32xf32, #tpu.memory_space<vmem>>, vector<32x32xf32>
    %cst_29 = arith.constant dense<0.000000e+00> : vector<8x32xf32>
    %42 = tpu.matmul %40, %41, %cst_29 {dimension_numbers = #tpu.dot_dimension_numbers<[1], [0], [0], [1], [0, 0, 1, 1], [], []>} : vector<8x32xf32>, vector<32x32xf32>, vector<8x32xf32> -> vector<8x32xf32>
    %c0_30 = arith.constant 0 : index
    %c0_31 = arith.constant 0 : index
    %43 = vector.load %arg9[%c0_30, %c0_31] : memref<1x32xf32, #tpu.memory_space<vmem>>, vector<1x32xf32>
    %44 = vector.broadcast %43 : vector<1x32xf32> to vector<8x32xf32>
    %45 = arith.addf %42, %44 : vector<8x32xf32>
    %c0_32 = arith.constant 0 : index
    %c0_33 = arith.constant 0 : index
    %46 = vector.load %arg10[%c0_32, %c0_33] : memref<32x32xf32, #tpu.memory_space<vmem>>, vector<32x32xf32>
    %cst_34 = arith.constant dense<0.000000e+00> : vector<8x32xf32>
    %47 = tpu.matmul %40, %46, %cst_34 {dimension_numbers = #tpu.dot_dimension_numbers<[1], [0], [0], [1], [0, 0, 1, 1], [], []>} : vector<8x32xf32>, vector<32x32xf32>, vector<8x32xf32> -> vector<8x32xf32>
    %c0_35 = arith.constant 0 : index
    %c0_36 = arith.constant 0 : index
    %48 = vector.load %arg11[%c0_35, %c0_36] : memref<1x32xf32, #tpu.memory_space<vmem>>, vector<1x32xf32>
    %49 = vector.broadcast %48 : vector<1x32xf32> to vector<8x32xf32>
    %50 = arith.addf %47, %49 : vector<8x32xf32>
    %c0_37 = arith.constant 0 : index
    %c0_38 = arith.constant 0 : index
    %51 = vector.load %arg12[%c0_37, %c0_38] : memref<32x32xf32, #tpu.memory_space<vmem>>, vector<32x32xf32>
    %cst_39 = arith.constant dense<0.000000e+00> : vector<8x32xf32>
    %52 = tpu.matmul %40, %51, %cst_39 {dimension_numbers = #tpu.dot_dimension_numbers<[1], [0], [0], [1], [0, 0, 1, 1], [], []>} : vector<8x32xf32>, vector<32x32xf32>, vector<8x32xf32> -> vector<8x32xf32>
    %c0_40 = arith.constant 0 : index
    %c0_41 = arith.constant 0 : index
    %53 = vector.load %arg13[%c0_40, %c0_41] : memref<1x32xf32, #tpu.memory_space<vmem>>, vector<1x32xf32>
    %54 = vector.broadcast %53 : vector<1x32xf32> to vector<8x32xf32>
    %55 = arith.addf %52, %54 : vector<8x32xf32>
    %cst_42 = arith.constant dense<0.000000e+00> : vector<8x8xf32>
    %56 = tpu.matmul %45, %50, %cst_42 {dimension_numbers = #tpu.dot_dimension_numbers<[1], [1], [0], [0], [0, 0, 1, 0], [], []>} : vector<8x32xf32>, vector<8x32xf32>, vector<8x8xf32> -> vector<8x8xf32>
    %cst_43 = arith.constant 0.176776692 : f32
    %57 = vector.broadcast %cst_43 : f32 to vector<8x8xf32>
    %58 = arith.mulf %56, %57 : vector<8x8xf32>
    %cst_44 = arith.constant dense<0xFF800000> : vector<8xf32>
    %59 = vector.multi_reduction <maximumf>, %58, %cst_44 [1] : vector<8x8xf32> to vector<8xf32>
    %60 = vector.shape_cast %59 : vector<8xf32> to vector<8x1xf32>
    %61 = vector.broadcast %60 : vector<8x1xf32> to vector<8x8xf32>
    %62 = arith.subf %58, %61 : vector<8x8xf32>
    %63 = math.exp %62 : vector<8x8xf32>
    %cst_45 = arith.constant dense<0.000000e+00> : vector<8xf32>
    %64 = vector.multi_reduction <add>, %63, %cst_45 [1] : vector<8x8xf32> to vector<8xf32>
    %65 = vector.shape_cast %64 : vector<8xf32> to vector<8x1xf32>
    %66 = vector.broadcast %65 : vector<8x1xf32> to vector<8x8xf32>
    %67 = arith.divf %63, %66 : vector<8x8xf32>
    %cst_46 = arith.constant dense<0.000000e+00> : vector<8x32xf32>
    %68 = tpu.matmul %67, %55, %cst_46 {dimension_numbers = #tpu.dot_dimension_numbers<[1], [0], [0], [1], [0, 0, 1, 1], [], []>} : vector<8x8xf32>, vector<8x32xf32>, vector<8x32xf32> -> vector<8x32xf32>
    %c0_47 = arith.constant 0 : index
    %c0_48 = arith.constant 0 : index
    %69 = vector.load %arg14[%c0_47, %c0_48] : memref<32x32xf32, #tpu.memory_space<vmem>>, vector<32x32xf32>
    %cst_49 = arith.constant dense<0.000000e+00> : vector<8x32xf32>
    %70 = tpu.matmul %68, %69, %cst_49 {dimension_numbers = #tpu.dot_dimension_numbers<[1], [0], [0], [1], [0, 0, 1, 1], [], []>} : vector<8x32xf32>, vector<32x32xf32>, vector<8x32xf32> -> vector<8x32xf32>
    %c0_50 = arith.constant 0 : index
    %c0_51 = arith.constant 0 : index
    %71 = vector.load %arg15[%c0_50, %c0_51] : memref<1x32xf32, #tpu.memory_space<vmem>>, vector<1x32xf32>
    %72 = vector.broadcast %71 : vector<1x32xf32> to vector<8x32xf32>
    %73 = arith.addf %70, %72 : vector<8x32xf32>
    %74 = arith.addf %73, %40 : vector<8x32xf32>
    %c0_52 = arith.constant 0 : index
    %c0_53 = arith.constant 0 : index
    %c0_54 = arith.constant 0 : index
    %75 = vector.load %arg16[%c0_52, %c0_53, %c0_54] : memref<2x8x32xf32, #tpu.memory_space<vmem>>, vector<1x8x32xf32>
    %76 = vector.shape_cast %75 : vector<1x8x32xf32> to vector<8x32xf32>
    %77 = vector.shape_cast %74 : vector<8x32xf32> to vector<1x8x32xf32>
    tpu.vector_store %arg16[%c0_52, %c0_53, %c0_54], %77 {strides = array<i32>} : memref<2x8x32xf32, #tpu.memory_space<vmem>>, vector<1x8x32xf32>,
    %c1 = arith.constant 1 : index
    %c0_55 = arith.constant 0 : index
    %c0_56 = arith.constant 0 : index
    %78 = vector.load %arg0[%c1, %c0_55, %c0_56] : memref<2x8x32xf32, #tpu.memory_space<vmem>>, vector<1x8x32xf32>
    %79 = vector.shape_cast %78 : vector<1x8x32xf32> to vector<8x32xf32>
    %c0_57 = arith.constant 0 : index
    %c0_58 = arith.constant 0 : index
    %80 = vector.load %arg2[%c0_57, %c0_58] : memref<32x32xf32, #tpu.memory_space<vmem>>, vector<32x32xf32>
    %cst_59 = arith.constant dense<0.000000e+00> : vector<8x32xf32>
    %81 = tpu.matmul %79, %80, %cst_59 {dimension_numbers = #tpu.dot_dimension_numbers<[1], [0], [0], [1], [0, 0, 1, 1], [], []>} : vector<8x32xf32>, vector<32x32xf32>, vector<8x32xf32> -> vector<8x32xf32>
    %82 = vector.extract_strided_slice %5 {offsets = [1, 0], sizes = [1, 32], strides = [1, 1]} : vector<2x32xf32> to vector<1x32xf32>
    %83 = vector.broadcast %82 : vector<1x32xf32> to vector<8x32xf32>
    %84 = arith.addf %81, %83 : vector<8x32xf32>
    %cst_60 = arith.constant 0.000000e+00 : f32
    %85 = vector.broadcast %cst_60 : f32 to vector<8x32xf32>
    %86 = arith.maximumf %84, %85 : vector<8x32xf32>
    %cst_61 = arith.constant dense<0.000000e+00> : vector<8xf32>
    %87 = vector.multi_reduction <add>, %86, %cst_61 [1] : vector<8x32xf32> to vector<8xf32>
    %88 = vector.shape_cast %87 : vector<8xf32> to vector<8x1xf32>
    %c0_62 = arith.constant 0 : index
    %c0_63 = arith.constant 0 : index
    %89 = vector.load %arg5[%c0_62, %c0_63] : memref<8x8xf32, #tpu.memory_space<vmem>>, vector<8x8xf32>
    %cst_64 = arith.constant dense<0.000000e+00> : vector<8x1xf32>
    %90 = tpu.matmul %89, %88, %cst_64 {dimension_numbers = #tpu.dot_dimension_numbers<[1], [0], [0], [1], [0, 0, 1, 1], [], []>} : vector<8x8xf32>, vector<8x1xf32>, vector<8x1xf32> -> vector<8x1xf32>
    %cst_65 = arith.constant 7.812500e-03 : f32
    %91 = vector.broadcast %cst_65 : f32 to vector<8x1xf32>
    %92 = arith.mulf %90, %91 : vector<8x1xf32>
    %93 = vector.broadcast %92 : vector<8x1xf32> to vector<8x32xf32>
    %94 = arith.subf %86, %93 : vector<8x32xf32>
    %95 = arith.mulf %94, %94 : vector<8x32xf32>
    %cst_66 = arith.constant dense<0.000000e+00> : vector<8xf32>
    %96 = vector.multi_reduction <add>, %95, %cst_66 [1] : vector<8x32xf32> to vector<8xf32>
    %97 = vector.shape_cast %96 : vector<8xf32> to vector<8x1xf32>
    %c0_67 = arith.constant 0 : index
    %c0_68 = arith.constant 0 : index
    %98 = vector.load %arg5[%c0_67, %c0_68] : memref<8x8xf32, #tpu.memory_space<vmem>>, vector<8x8xf32>
    %cst_69 = arith.constant dense<0.000000e+00> : vector<8x1xf32>
    %99 = tpu.matmul %98, %97, %cst_69 {dimension_numbers = #tpu.dot_dimension_numbers<[1], [0], [0], [1], [0, 0, 1, 1], [], []>} : vector<8x8xf32>, vector<8x1xf32>, vector<8x1xf32> -> vector<8x1xf32>
    %cst_70 = arith.constant 7.812500e-03 : f32
    %100 = vector.broadcast %cst_70 : f32 to vector<8x1xf32>
    %101 = arith.mulf %99, %100 : vector<8x1xf32>
    %cst_71 = arith.constant 9.99999997E-7 : f32
    %102 = vector.broadcast %cst_71 : f32 to vector<8x1xf32>
    %103 = arith.addf %101, %102 : vector<8x1xf32>
    %104 = math.rsqrt %103 : vector<8x1xf32>
    %105 = vector.broadcast %104 : vector<8x1xf32> to vector<8x32xf32>
    %106 = arith.mulf %94, %105 : vector<8x32xf32>
    %c0_72 = arith.constant 0 : index
    %c0_73 = arith.constant 0 : index
    %107 = vector.load %arg6[%c0_72, %c0_73] : memref<8x1xf32, #tpu.memory_space<vmem>>, vector<8x1xf32>
    %108 = vector.broadcast %107 : vector<8x1xf32> to vector<8x32xf32>
    %109 = arith.mulf %106, %108 : vector<8x32xf32>
    %c0_74 = arith.constant 0 : index
    %c0_75 = arith.constant 0 : index
    %110 = vector.load %arg7[%c0_74, %c0_75] : memref<8x1xf32, #tpu.memory_space<vmem>>, vector<8x1xf32>
    %111 = vector.broadcast %110 : vector<8x1xf32> to vector<8x32xf32>
    %112 = arith.addf %109, %111 : vector<8x32xf32>
    %c0_76 = arith.constant 0 : index
    %c0_77 = arith.constant 0 : index
    %113 = vector.load %arg8[%c0_76, %c0_77] : memref<32x32xf32, #tpu.memory_space<vmem>>, vector<32x32xf32>
    %cst_78 = arith.constant dense<0.000000e+00> : vector<8x32xf32>
    %114 = tpu.matmul %112, %113, %cst_78 {dimension_numbers = #tpu.dot_dimension_numbers<[1], [0], [0], [1], [0, 0, 1, 1], [], []>} : vector<8x32xf32>, vector<32x32xf32>, vector<8x32xf32> -> vector<8x32xf32>
    %c0_79 = arith.constant 0 : index
    %c0_80 = arith.constant 0 : index
    %115 = vector.load %arg9[%c0_79, %c0_80] : memref<1x32xf32, #tpu.memory_space<vmem>>, vector<1x32xf32>
    %116 = vector.broadcast %115 : vector<1x32xf32> to vector<8x32xf32>
    %117 = arith.addf %114, %116 : vector<8x32xf32>
    %c0_81 = arith.constant 0 : index
    %c0_82 = arith.constant 0 : index
    %118 = vector.load %arg10[%c0_81, %c0_82] : memref<32x32xf32, #tpu.memory_space<vmem>>, vector<32x32xf32>
    %cst_83 = arith.constant dense<0.000000e+00> : vector<8x32xf32>
    %119 = tpu.matmul %112, %118, %cst_83 {dimension_numbers = #tpu.dot_dimension_numbers<[1], [0], [0], [1], [0, 0, 1, 1], [], []>} : vector<8x32xf32>, vector<32x32xf32>, vector<8x32xf32> -> vector<8x32xf32>
    %c0_84 = arith.constant 0 : index
    %c0_85 = arith.constant 0 : index
    %120 = vector.load %arg11[%c0_84, %c0_85] : memref<1x32xf32, #tpu.memory_space<vmem>>, vector<1x32xf32>
    %121 = vector.broadcast %120 : vector<1x32xf32> to vector<8x32xf32>
    %122 = arith.addf %119, %121 : vector<8x32xf32>
    %c0_86 = arith.constant 0 : index
    %c0_87 = arith.constant 0 : index
    %123 = vector.load %arg12[%c0_86, %c0_87] : memref<32x32xf32, #tpu.memory_space<vmem>>, vector<32x32xf32>
    %cst_88 = arith.constant dense<0.000000e+00> : vector<8x32xf32>
    %124 = tpu.matmul %112, %123, %cst_88 {dimension_numbers = #tpu.dot_dimension_numbers<[1], [0], [0], [1], [0, 0, 1, 1], [], []>} : vector<8x32xf32>, vector<32x32xf32>, vector<8x32xf32> -> vector<8x32xf32>
    %c0_89 = arith.constant 0 : index
    %c0_90 = arith.constant 0 : index
    %125 = vector.load %arg13[%c0_89, %c0_90] : memref<1x32xf32, #tpu.memory_space<vmem>>, vector<1x32xf32>
    %126 = vector.broadcast %125 : vector<1x32xf32> to vector<8x32xf32>
    %127 = arith.addf %124, %126 : vector<8x32xf32>
    %cst_91 = arith.constant dense<0.000000e+00> : vector<8x8xf32>
    %128 = tpu.matmul %117, %122, %cst_91 {dimension_numbers = #tpu.dot_dimension_numbers<[1], [1], [0], [0], [0, 0, 1, 0], [], []>} : vector<8x32xf32>, vector<8x32xf32>, vector<8x8xf32> -> vector<8x8xf32>
    %cst_92 = arith.constant 0.176776692 : f32
    %129 = vector.broadcast %cst_92 : f32 to vector<8x8xf32>
    %130 = arith.mulf %128, %129 : vector<8x8xf32>
    %cst_93 = arith.constant dense<0xFF800000> : vector<8xf32>
    %131 = vector.multi_reduction <maximumf>, %130, %cst_93 [1] : vector<8x8xf32> to vector<8xf32>
    %132 = vector.shape_cast %131 : vector<8xf32> to vector<8x1xf32>
    %133 = vector.broadcast %132 : vector<8x1xf32> to vector<8x8xf32>
    %134 = arith.subf %130, %133 : vector<8x8xf32>
    %135 = math.exp %134 : vector<8x8xf32>
    %cst_94 = arith.constant dense<0.000000e+00> : vector<8xf32>
    %136 = vector.multi_reduction <add>, %135, %cst_94 [1] : vector<8x8xf32> to vector<8xf32>
    %137 = vector.shape_cast %136 : vector<8xf32> to vector<8x1xf32>
    %138 = vector.broadcast %137 : vector<8x1xf32> to vector<8x8xf32>
    %139 = arith.divf %135, %138 : vector<8x8xf32>
    %cst_95 = arith.constant dense<0.000000e+00> : vector<8x32xf32>
    %140 = tpu.matmul %139, %127, %cst_95 {dimension_numbers = #tpu.dot_dimension_numbers<[1], [0], [0], [1], [0, 0, 1, 1], [], []>} : vector<8x8xf32>, vector<8x32xf32>, vector<8x32xf32> -> vector<8x32xf32>
    %c0_96 = arith.constant 0 : index
    %c0_97 = arith.constant 0 : index
    %141 = vector.load %arg14[%c0_96, %c0_97] : memref<32x32xf32, #tpu.memory_space<vmem>>, vector<32x32xf32>
    %cst_98 = arith.constant dense<0.000000e+00> : vector<8x32xf32>
    %142 = tpu.matmul %140, %141, %cst_98 {dimension_numbers = #tpu.dot_dimension_numbers<[1], [0], [0], [1], [0, 0, 1, 1], [], []>} : vector<8x32xf32>, vector<32x32xf32>, vector<8x32xf32> -> vector<8x32xf32>
    %c0_99 = arith.constant 0 : index
    %c0_100 = arith.constant 0 : index
    %143 = vector.load %arg15[%c0_99, %c0_100] : memref<1x32xf32, #tpu.memory_space<vmem>>, vector<1x32xf32>
    %144 = vector.broadcast %143 : vector<1x32xf32> to vector<8x32xf32>
    %145 = arith.addf %142, %144 : vector<8x32xf32>
    %146 = arith.addf %145, %112 : vector<8x32xf32>
    %c1_101 = arith.constant 1 : index
    %c0_102 = arith.constant 0 : index
    %c0_103 = arith.constant 0 : index
    %147 = vector.load %arg16[%c1_101, %c0_102, %c0_103] : memref<2x8x32xf32, #tpu.memory_space<vmem>>, vector<1x8x32xf32>
    %148 = vector.shape_cast %147 : vector<1x8x32xf32> to vector<8x32xf32>
    %149 = vector.shape_cast %146 : vector<8x32xf32> to vector<1x8x32xf32>
    tpu.vector_store %arg16[%c1_101, %c0_102, %c0_103], %149 {strides = array<i32>} : memref<2x8x32xf32, #tpu.memory_space<vmem>>, vector<1x8x32xf32>,
    return
  }
}

module attributes {stable_mosaic.version = 11 : i64} {
  func.func @_linear_block_kernel(%arg0: memref<2x8x4xf32, #tpu.memory_space<vmem>>, %arg1: memref<2x128xf32, #tpu.memory_space<vmem>>, %arg2: memref<4x32xf32, #tpu.memory_space<vmem>>, %arg3: memref<128x32xf32, #tpu.memory_space<vmem>>, %arg4: memref<1x32xf32, #tpu.memory_space<vmem>>, %arg5: memref<8x8xf32, #tpu.memory_space<vmem>>, %arg6: memref<8x1xf32, #tpu.memory_space<vmem>>, %arg7: memref<8x1xf32, #tpu.memory_space<vmem>>, %arg8: memref<32x32xf32, #tpu.memory_space<vmem>>, %arg9: memref<1x32xf32, #tpu.memory_space<vmem>>, %arg10: memref<32x32xf32, #tpu.memory_space<vmem>>, %arg11: memref<1x32xf32, #tpu.memory_space<vmem>>, %arg12: memref<32x32xf32, #tpu.memory_space<vmem>>, %arg13: memref<1x32xf32, #tpu.memory_space<vmem>>, %arg14: memref<32x32xf32, #tpu.memory_space<vmem>>, %arg15: memref<1x32xf32, #tpu.memory_space<vmem>>, %arg16: memref<2x8x32xf32, #tpu.memory_space<vmem>>) attributes {dimension_semantics = [], scalar_prefetch = 0 : i64, scratch_operands = 0 : i64, tpu.core_type = #tpu.core_type<tc>} {
    %c0 = arith.constant 0 : index
    %c0_0 = arith.constant 0 : index
    %0 = vector.load %arg1[%c0, %c0_0] : memref<2x128xf32, #tpu.memory_space<vmem>>, vector<2x128xf32>
    %c0_1 = arith.constant 0 : index
    %c0_2 = arith.constant 0 : index
    %1 = vector.load %arg3[%c0_1, %c0_2] : memref<128x32xf32, #tpu.memory_space<vmem>>, vector<128x32xf32>
    %cst = arith.constant dense<0.000000e+00> : vector<2x32xf32>
    %2 = tpu.matmul %0, %1, %cst {dimension_numbers = #tpu.dot_dimension_numbers<[1], [0], [0], [1], [0, 0, 1, 1], [], []>} : vector<2x128xf32>, vector<128x32xf32>, vector<2x32xf32> -> vector<2x32xf32>
    %c0_3 = arith.constant 0 : index
    %c0_4 = arith.constant 0 : index
    %3 = vector.load %arg4[%c0_3, %c0_4] : memref<1x32xf32, #tpu.memory_space<vmem>>, vector<1x32xf32>
    %4 = vector.broadcast %3 : vector<1x32xf32> to vector<2x32xf32>
    %5 = arith.addf %2, %4 : vector<2x32xf32>
    %c0_5 = arith.constant 0 : index
    %c0_6 = arith.constant 0 : index
    %c0_7 = arith.constant 0 : index
    %6 = vector.load %arg0[%c0_5, %c0_6, %c0_7] : memref<2x8x4xf32, #tpu.memory_space<vmem>>, vector<1x8x4xf32>
    %7 = vector.shape_cast %6 : vector<1x8x4xf32> to vector<8x4xf32>
    %c0_8 = arith.constant 0 : index
    %c0_9 = arith.constant 0 : index
    %8 = vector.load %arg2[%c0_8, %c0_9] : memref<4x32xf32, #tpu.memory_space<vmem>>, vector<4x32xf32>
    %cst_10 = arith.constant dense<0.000000e+00> : vector<8x32xf32>
    %9 = tpu.matmul %7, %8, %cst_10 {dimension_numbers = #tpu.dot_dimension_numbers<[1], [0], [0], [1], [0, 0, 1, 1], [], []>} : vector<8x4xf32>, vector<4x32xf32>, vector<8x32xf32> -> vector<8x32xf32>
    %10 = vector.extract_strided_slice %5 {offsets = [0, 0], sizes = [1, 32], strides = [1, 1]} : vector<2x32xf32> to vector<1x32xf32>
    %11 = vector.broadcast %10 : vector<1x32xf32> to vector<8x32xf32>
    %12 = arith.addf %9, %11 : vector<8x32xf32>
    %cst_11 = arith.constant 0.000000e+00 : f32
    %13 = vector.broadcast %cst_11 : f32 to vector<8x32xf32>
    %14 = arith.maximumf %12, %13 : vector<8x32xf32>
    %cst_12 = arith.constant dense<0.000000e+00> : vector<8xf32>
    %15 = vector.multi_reduction <add>, %14, %cst_12 [1] : vector<8x32xf32> to vector<8xf32>
    %16 = vector.shape_cast %15 : vector<8xf32> to vector<8x1xf32>
    %c0_13 = arith.constant 0 : index
    %c0_14 = arith.constant 0 : index
    %17 = vector.load %arg5[%c0_13, %c0_14] : memref<8x8xf32, #tpu.memory_space<vmem>>, vector<8x8xf32>
    %cst_15 = arith.constant dense<0.000000e+00> : vector<8x1xf32>
    %18 = tpu.matmul %17, %16, %cst_15 {dimension_numbers = #tpu.dot_dimension_numbers<[1], [0], [0], [1], [0, 0, 1, 1], [], []>} : vector<8x8xf32>, vector<8x1xf32>, vector<8x1xf32> -> vector<8x1xf32>
    %cst_16 = arith.constant 7.812500e-03 : f32
    %19 = vector.broadcast %cst_16 : f32 to vector<8x1xf32>
    %20 = arith.mulf %18, %19 : vector<8x1xf32>
    %21 = vector.broadcast %20 : vector<8x1xf32> to vector<8x32xf32>
    %22 = arith.subf %14, %21 : vector<8x32xf32>
    %23 = arith.mulf %22, %22 : vector<8x32xf32>
    %cst_17 = arith.constant dense<0.000000e+00> : vector<8xf32>
    %24 = vector.multi_reduction <add>, %23, %cst_17 [1] : vector<8x32xf32> to vector<8xf32>
    %25 = vector.shape_cast %24 : vector<8xf32> to vector<8x1xf32>
    %c0_18 = arith.constant 0 : index
    %c0_19 = arith.constant 0 : index
    %26 = vector.load %arg5[%c0_18, %c0_19] : memref<8x8xf32, #tpu.memory_space<vmem>>, vector<8x8xf32>
    %cst_20 = arith.constant dense<0.000000e+00> : vector<8x1xf32>
    %27 = tpu.matmul %26, %25, %cst_20 {dimension_numbers = #tpu.dot_dimension_numbers<[1], [0], [0], [1], [0, 0, 1, 1], [], []>} : vector<8x8xf32>, vector<8x1xf32>, vector<8x1xf32> -> vector<8x1xf32>
    %cst_21 = arith.constant 7.812500e-03 : f32
    %28 = vector.broadcast %cst_21 : f32 to vector<8x1xf32>
    %29 = arith.mulf %27, %28 : vector<8x1xf32>
    %cst_22 = arith.constant 9.99999997E-7 : f32
    %30 = vector.broadcast %cst_22 : f32 to vector<8x1xf32>
    %31 = arith.addf %29, %30 : vector<8x1xf32>
    %32 = math.rsqrt %31 : vector<8x1xf32>
    %33 = vector.broadcast %32 : vector<8x1xf32> to vector<8x32xf32>
    %34 = arith.mulf %22, %33 : vector<8x32xf32>
    %c0_23 = arith.constant 0 : index
    %c0_24 = arith.constant 0 : index
    %35 = vector.load %arg6[%c0_23, %c0_24] : memref<8x1xf32, #tpu.memory_space<vmem>>, vector<8x1xf32>
    %36 = vector.broadcast %35 : vector<8x1xf32> to vector<8x32xf32>
    %37 = arith.mulf %34, %36 : vector<8x32xf32>
    %c0_25 = arith.constant 0 : index
    %c0_26 = arith.constant 0 : index
    %38 = vector.load %arg7[%c0_25, %c0_26] : memref<8x1xf32, #tpu.memory_space<vmem>>, vector<8x1xf32>
    %39 = vector.broadcast %38 : vector<8x1xf32> to vector<8x32xf32>
    %40 = arith.addf %37, %39 : vector<8x32xf32>
    %c0_27 = arith.constant 0 : index
    %c0_28 = arith.constant 0 : index
    %41 = vector.load %arg8[%c0_27, %c0_28] : memref<32x32xf32, #tpu.memory_space<vmem>>, vector<32x32xf32>
    %cst_29 = arith.constant dense<0.000000e+00> : vector<8x32xf32>
    %42 = tpu.matmul %40, %41, %cst_29 {dimension_numbers = #tpu.dot_dimension_numbers<[1], [0], [0], [1], [0, 0, 1, 1], [], []>} : vector<8x32xf32>, vector<32x32xf32>, vector<8x32xf32> -> vector<8x32xf32>
    %c0_30 = arith.constant 0 : index
    %c0_31 = arith.constant 0 : index
    %43 = vector.load %arg9[%c0_30, %c0_31] : memref<1x32xf32, #tpu.memory_space<vmem>>, vector<1x32xf32>
    %44 = vector.broadcast %43 : vector<1x32xf32> to vector<8x32xf32>
    %45 = arith.addf %42, %44 : vector<8x32xf32>
    %c0_32 = arith.constant 0 : index
    %c0_33 = arith.constant 0 : index
    %46 = vector.load %arg10[%c0_32, %c0_33] : memref<32x32xf32, #tpu.memory_space<vmem>>, vector<32x32xf32>
    %cst_34 = arith.constant dense<0.000000e+00> : vector<8x32xf32>
    %47 = tpu.matmul %40, %46, %cst_34 {dimension_numbers = #tpu.dot_dimension_numbers<[1], [0], [0], [1], [0, 0, 1, 1], [], []>} : vector<8x32xf32>, vector<32x32xf32>, vector<8x32xf32> -> vector<8x32xf32>
    %c0_35 = arith.constant 0 : index
    %c0_36 = arith.constant 0 : index
    %48 = vector.load %arg11[%c0_35, %c0_36] : memref<1x32xf32, #tpu.memory_space<vmem>>, vector<1x32xf32>
    %49 = vector.broadcast %48 : vector<1x32xf32> to vector<8x32xf32>
    %50 = arith.addf %47, %49 : vector<8x32xf32>
    %c0_37 = arith.constant 0 : index
    %c0_38 = arith.constant 0 : index
    %51 = vector.load %arg12[%c0_37, %c0_38] : memref<32x32xf32, #tpu.memory_space<vmem>>, vector<32x32xf32>
    %cst_39 = arith.constant dense<0.000000e+00> : vector<8x32xf32>
    %52 = tpu.matmul %40, %51, %cst_39 {dimension_numbers = #tpu.dot_dimension_numbers<[1], [0], [0], [1], [0, 0, 1, 1], [], []>} : vector<8x32xf32>, vector<32x32xf32>, vector<8x32xf32> -> vector<8x32xf32>
    %c0_40 = arith.constant 0 : index
    %c0_41 = arith.constant 0 : index
    %53 = vector.load %arg13[%c0_40, %c0_41] : memref<1x32xf32, #tpu.memory_space<vmem>>, vector<1x32xf32>
    %54 = vector.broadcast %53 : vector<1x32xf32> to vector<8x32xf32>
    %55 = arith.addf %52, %54 : vector<8x32xf32>
    %cst_42 = arith.constant dense<0.000000e+00> : vector<8x8xf32>
    %56 = tpu.matmul %45, %50, %cst_42 {dimension_numbers = #tpu.dot_dimension_numbers<[1], [1], [0], [0], [0, 0, 1, 0], [], []>} : vector<8x32xf32>, vector<8x32xf32>, vector<8x8xf32> -> vector<8x8xf32>
    %cst_43 = arith.constant 0.176776692 : f32
    %57 = vector.broadcast %cst_43 : f32 to vector<8x8xf32>
    %58 = arith.mulf %56, %57 : vector<8x8xf32>
    %cst_44 = arith.constant dense<0xFF800000> : vector<8xf32>
    %59 = vector.multi_reduction <maximumf>, %58, %cst_44 [1] : vector<8x8xf32> to vector<8xf32>
    %60 = vector.shape_cast %59 : vector<8xf32> to vector<8x1xf32>
    %61 = vector.broadcast %60 : vector<8x1xf32> to vector<8x8xf32>
    %62 = arith.subf %58, %61 : vector<8x8xf32>
    %63 = math.exp %62 : vector<8x8xf32>
    %cst_45 = arith.constant dense<0.000000e+00> : vector<8xf32>
    %64 = vector.multi_reduction <add>, %63, %cst_45 [1] : vector<8x8xf32> to vector<8xf32>
    %65 = vector.shape_cast %64 : vector<8xf32> to vector<8x1xf32>
    %66 = vector.broadcast %65 : vector<8x1xf32> to vector<8x8xf32>
    %67 = arith.divf %63, %66 : vector<8x8xf32>
    %cst_46 = arith.constant dense<0.000000e+00> : vector<8x32xf32>
    %68 = tpu.matmul %67, %55, %cst_46 {dimension_numbers = #tpu.dot_dimension_numbers<[1], [0], [0], [1], [0, 0, 1, 1], [], []>} : vector<8x8xf32>, vector<8x32xf32>, vector<8x32xf32> -> vector<8x32xf32>
    %c0_47 = arith.constant 0 : index
    %c0_48 = arith.constant 0 : index
    %69 = vector.load %arg14[%c0_47, %c0_48] : memref<32x32xf32, #tpu.memory_space<vmem>>, vector<32x32xf32>
    %cst_49 = arith.constant dense<0.000000e+00> : vector<8x32xf32>
    %70 = tpu.matmul %68, %69, %cst_49 {dimension_numbers = #tpu.dot_dimension_numbers<[1], [0], [0], [1], [0, 0, 1, 1], [], []>} : vector<8x32xf32>, vector<32x32xf32>, vector<8x32xf32> -> vector<8x32xf32>
    %c0_50 = arith.constant 0 : index
    %c0_51 = arith.constant 0 : index
    %71 = vector.load %arg15[%c0_50, %c0_51] : memref<1x32xf32, #tpu.memory_space<vmem>>, vector<1x32xf32>
    %72 = vector.broadcast %71 : vector<1x32xf32> to vector<8x32xf32>
    %73 = arith.addf %70, %72 : vector<8x32xf32>
    %74 = arith.addf %73, %40 : vector<8x32xf32>
    %c0_52 = arith.constant 0 : index
    %c0_53 = arith.constant 0 : index
    %c0_54 = arith.constant 0 : index
    %75 = vector.load %arg16[%c0_52, %c0_53, %c0_54] : memref<2x8x32xf32, #tpu.memory_space<vmem>>, vector<1x8x32xf32>
    %76 = vector.shape_cast %75 : vector<1x8x32xf32> to vector<8x32xf32>
    %77 = vector.shape_cast %74 : vector<8x32xf32> to vector<1x8x32xf32>
    tpu.vector_store %arg16[%c0_52, %c0_53, %c0_54], %77 {strides = array<i32>} : memref<2x8x32xf32, #tpu.memory_space<vmem>>, vector<1x8x32xf32>,
    %c1 = arith.constant 1 : index
    %c0_55 = arith.constant 0 : index
    %c0_56 = arith.constant 0 : index
    %78 = vector.load %arg0[%c1, %c0_55, %c0_56] : memref<2x8x4xf32, #tpu.memory_space<vmem>>, vector<1x8x4xf32>
    %79 = vector.shape_cast %78 : vector<1x8x4xf32> to vector<8x4xf32>
    %c0_57 = arith.constant 0 : index
    %c0_58 = arith.constant 0 : index
    %80 = vector.load %arg2[%c0_57, %c0_58] : memref<4x32xf32, #tpu.memory_space<vmem>>, vector<4x32xf32>
    %cst_59 = arith.constant dense<0.000000e+00> : vector<8x32xf32>
    %81 = tpu.matmul %79, %80, %cst_59 {dimension_numbers = #tpu.dot_dimension_numbers<[1], [0], [0], [1], [0, 0, 1, 1], [], []>} : vector<8x4xf32>, vector<4x32xf32>, vector<8x32xf32> -> vector<8x32xf32>
    %82 = vector.extract_strided_slice %5 {offsets = [1, 0], sizes = [1, 32], strides = [1, 1]} : vector<2x32xf32> to vector<1x32xf32>
    %83 = vector.broadcast %82 : vector<1x32xf32> to vector<8x32xf32>
    %84 = arith.addf %81, %83 : vector<8x32xf32>
    %cst_60 = arith.constant 0.000000e+00 : f32
    %85 = vector.broadcast %cst_60 : f32 to vector<8x32xf32>
    %86 = arith.maximumf %84, %85 : vector<8x32xf32>
    %cst_61 = arith.constant dense<0.000000e+00> : vector<8xf32>
    %87 = vector.multi_reduction <add>, %86, %cst_61 [1] : vector<8x32xf32> to vector<8xf32>
    %88 = vector.shape_cast %87 : vector<8xf32> to vector<8x1xf32>
    %c0_62 = arith.constant 0 : index
    %c0_63 = arith.constant 0 : index
    %89 = vector.load %arg5[%c0_62, %c0_63] : memref<8x8xf32, #tpu.memory_space<vmem>>, vector<8x8xf32>
    %cst_64 = arith.constant dense<0.000000e+00> : vector<8x1xf32>
    %90 = tpu.matmul %89, %88, %cst_64 {dimension_numbers = #tpu.dot_dimension_numbers<[1], [0], [0], [1], [0, 0, 1, 1], [], []>} : vector<8x8xf32>, vector<8x1xf32>, vector<8x1xf32> -> vector<8x1xf32>
    %cst_65 = arith.constant 7.812500e-03 : f32
    %91 = vector.broadcast %cst_65 : f32 to vector<8x1xf32>
    %92 = arith.mulf %90, %91 : vector<8x1xf32>
    %93 = vector.broadcast %92 : vector<8x1xf32> to vector<8x32xf32>
    %94 = arith.subf %86, %93 : vector<8x32xf32>
    %95 = arith.mulf %94, %94 : vector<8x32xf32>
    %cst_66 = arith.constant dense<0.000000e+00> : vector<8xf32>
    %96 = vector.multi_reduction <add>, %95, %cst_66 [1] : vector<8x32xf32> to vector<8xf32>
    %97 = vector.shape_cast %96 : vector<8xf32> to vector<8x1xf32>
    %c0_67 = arith.constant 0 : index
    %c0_68 = arith.constant 0 : index
    %98 = vector.load %arg5[%c0_67, %c0_68] : memref<8x8xf32, #tpu.memory_space<vmem>>, vector<8x8xf32>
    %cst_69 = arith.constant dense<0.000000e+00> : vector<8x1xf32>
    %99 = tpu.matmul %98, %97, %cst_69 {dimension_numbers = #tpu.dot_dimension_numbers<[1], [0], [0], [1], [0, 0, 1, 1], [], []>} : vector<8x8xf32>, vector<8x1xf32>, vector<8x1xf32> -> vector<8x1xf32>
    %cst_70 = arith.constant 7.812500e-03 : f32
    %100 = vector.broadcast %cst_70 : f32 to vector<8x1xf32>
    %101 = arith.mulf %99, %100 : vector<8x1xf32>
    %cst_71 = arith.constant 9.99999997E-7 : f32
    %102 = vector.broadcast %cst_71 : f32 to vector<8x1xf32>
    %103 = arith.addf %101, %102 : vector<8x1xf32>
    %104 = math.rsqrt %103 : vector<8x1xf32>
    %105 = vector.broadcast %104 : vector<8x1xf32> to vector<8x32xf32>
    %106 = arith.mulf %94, %105 : vector<8x32xf32>
    %c0_72 = arith.constant 0 : index
    %c0_73 = arith.constant 0 : index
    %107 = vector.load %arg6[%c0_72, %c0_73] : memref<8x1xf32, #tpu.memory_space<vmem>>, vector<8x1xf32>
    %108 = vector.broadcast %107 : vector<8x1xf32> to vector<8x32xf32>
    %109 = arith.mulf %106, %108 : vector<8x32xf32>
    %c0_74 = arith.constant 0 : index
    %c0_75 = arith.constant 0 : index
    %110 = vector.load %arg7[%c0_74, %c0_75] : memref<8x1xf32, #tpu.memory_space<vmem>>, vector<8x1xf32>
    %111 = vector.broadcast %110 : vector<8x1xf32> to vector<8x32xf32>
    %112 = arith.addf %109, %111 : vector<8x32xf32>
    %c0_76 = arith.constant 0 : index
    %c0_77 = arith.constant 0 : index
    %113 = vector.load %arg8[%c0_76, %c0_77] : memref<32x32xf32, #tpu.memory_space<vmem>>, vector<32x32xf32>
    %cst_78 = arith.constant dense<0.000000e+00> : vector<8x32xf32>
    %114 = tpu.matmul %112, %113, %cst_78 {dimension_numbers = #tpu.dot_dimension_numbers<[1], [0], [0], [1], [0, 0, 1, 1], [], []>} : vector<8x32xf32>, vector<32x32xf32>, vector<8x32xf32> -> vector<8x32xf32>
    %c0_79 = arith.constant 0 : index
    %c0_80 = arith.constant 0 : index
    %115 = vector.load %arg9[%c0_79, %c0_80] : memref<1x32xf32, #tpu.memory_space<vmem>>, vector<1x32xf32>
    %116 = vector.broadcast %115 : vector<1x32xf32> to vector<8x32xf32>
    %117 = arith.addf %114, %116 : vector<8x32xf32>
    %c0_81 = arith.constant 0 : index
    %c0_82 = arith.constant 0 : index
    %118 = vector.load %arg10[%c0_81, %c0_82] : memref<32x32xf32, #tpu.memory_space<vmem>>, vector<32x32xf32>
    %cst_83 = arith.constant dense<0.000000e+00> : vector<8x32xf32>
    %119 = tpu.matmul %112, %118, %cst_83 {dimension_numbers = #tpu.dot_dimension_numbers<[1], [0], [0], [1], [0, 0, 1, 1], [], []>} : vector<8x32xf32>, vector<32x32xf32>, vector<8x32xf32> -> vector<8x32xf32>
    %c0_84 = arith.constant 0 : index
    %c0_85 = arith.constant 0 : index
    %120 = vector.load %arg11[%c0_84, %c0_85] : memref<1x32xf32, #tpu.memory_space<vmem>>, vector<1x32xf32>
    %121 = vector.broadcast %120 : vector<1x32xf32> to vector<8x32xf32>
    %122 = arith.addf %119, %121 : vector<8x32xf32>
    %c0_86 = arith.constant 0 : index
    %c0_87 = arith.constant 0 : index
    %123 = vector.load %arg12[%c0_86, %c0_87] : memref<32x32xf32, #tpu.memory_space<vmem>>, vector<32x32xf32>
    %cst_88 = arith.constant dense<0.000000e+00> : vector<8x32xf32>
    %124 = tpu.matmul %112, %123, %cst_88 {dimension_numbers = #tpu.dot_dimension_numbers<[1], [0], [0], [1], [0, 0, 1, 1], [], []>} : vector<8x32xf32>, vector<32x32xf32>, vector<8x32xf32> -> vector<8x32xf32>
    %c0_89 = arith.constant 0 : index
    %c0_90 = arith.constant 0 : index
    %125 = vector.load %arg13[%c0_89, %c0_90] : memref<1x32xf32, #tpu.memory_space<vmem>>, vector<1x32xf32>
    %126 = vector.broadcast %125 : vector<1x32xf32> to vector<8x32xf32>
    %127 = arith.addf %124, %126 : vector<8x32xf32>
    %cst_91 = arith.constant dense<0.000000e+00> : vector<8x8xf32>
    %128 = tpu.matmul %117, %122, %cst_91 {dimension_numbers = #tpu.dot_dimension_numbers<[1], [1], [0], [0], [0, 0, 1, 0], [], []>} : vector<8x32xf32>, vector<8x32xf32>, vector<8x8xf32> -> vector<8x8xf32>
    %cst_92 = arith.constant 0.176776692 : f32
    %129 = vector.broadcast %cst_92 : f32 to vector<8x8xf32>
    %130 = arith.mulf %128, %129 : vector<8x8xf32>
    %cst_93 = arith.constant dense<0xFF800000> : vector<8xf32>
    %131 = vector.multi_reduction <maximumf>, %130, %cst_93 [1] : vector<8x8xf32> to vector<8xf32>
    %132 = vector.shape_cast %131 : vector<8xf32> to vector<8x1xf32>
    %133 = vector.broadcast %132 : vector<8x1xf32> to vector<8x8xf32>
    %134 = arith.subf %130, %133 : vector<8x8xf32>
    %135 = math.exp %134 : vector<8x8xf32>
    %cst_94 = arith.constant dense<0.000000e+00> : vector<8xf32>
    %136 = vector.multi_reduction <add>, %135, %cst_94 [1] : vector<8x8xf32> to vector<8xf32>
    %137 = vector.shape_cast %136 : vector<8xf32> to vector<8x1xf32>
    %138 = vector.broadcast %137 : vector<8x1xf32> to vector<8x8xf32>
    %139 = arith.divf %135, %138 : vector<8x8xf32>
    %cst_95 = arith.constant dense<0.000000e+00> : vector<8x32xf32>
    %140 = tpu.matmul %139, %127, %cst_95 {dimension_numbers = #tpu.dot_dimension_numbers<[1], [0], [0], [1], [0, 0, 1, 1], [], []>} : vector<8x8xf32>, vector<8x32xf32>, vector<8x32xf32> -> vector<8x32xf32>
    %c0_96 = arith.constant 0 : index
    %c0_97 = arith.constant 0 : index
    %141 = vector.load %arg14[%c0_96, %c0_97] : memref<32x32xf32, #tpu.memory_space<vmem>>, vector<32x32xf32>
    %cst_98 = arith.constant dense<0.000000e+00> : vector<8x32xf32>
    %142 = tpu.matmul %140, %141, %cst_98 {dimension_numbers = #tpu.dot_dimension_numbers<[1], [0], [0], [1], [0, 0, 1, 1], [], []>} : vector<8x32xf32>, vector<32x32xf32>, vector<8x32xf32> -> vector<8x32xf32>
    %c0_99 = arith.constant 0 : index
    %c0_100 = arith.constant 0 : index
    %143 = vector.load %arg15[%c0_99, %c0_100] : memref<1x32xf32, #tpu.memory_space<vmem>>, vector<1x32xf32>
    %144 = vector.broadcast %143 : vector<1x32xf32> to vector<8x32xf32>
    %145 = arith.addf %142, %144 : vector<8x32xf32>
    %146 = arith.addf %145, %112 : vector<8x32xf32>
    %c1_101 = arith.constant 1 : index
    %c0_102 = arith.constant 0 : index
    %c0_103 = arith.constant 0 : index
    %147 = vector.load %arg16[%c1_101, %c0_102, %c0_103] : memref<2x8x32xf32, #tpu.memory_space<vmem>>, vector<1x8x32xf32>
    %148 = vector.shape_cast %147 : vector<1x8x32xf32> to vector<8x32xf32>
    %149 = vector.shape_cast %146 : vector<8x32xf32> to vector<1x8x32xf32>
    tpu.vector_store %arg16[%c1_101, %c0_102, %c0_103], %149 {strides = array<i32>} : memref<2x8x32xf32, #tpu.memory_space<vmem>>, vector<1x8x32xf32>,
    return
  }
}

module attributes {stable_mosaic.version = 11 : i64} {
  func.func @_linear_bias_kernel(%arg0: i32, %arg1: memref<16x32xf32, #tpu.memory_space<vmem>>, %arg2: memref<32x4xf32, #tpu.memory_space<vmem>>, %arg3: memref<1x4xf32, #tpu.memory_space<vmem>>, %arg4: memref<16x4xf32, #tpu.memory_space<vmem>>) attributes {dimension_semantics = [#tpu.dimension_semantics<parallel>], iteration_bounds = array<i64: 1>, scalar_prefetch = 0 : i64, scratch_operands = 0 : i64, tpu.core_type = #tpu.core_type<tc>, window_params = [{transform_indices = @transform_0, window_bounds = array<i64: 16, 32>}, {pipeline_mode = #tpu.pipeline_mode<synchronous>, transform_indices = @transform_1, window_bounds = array<i64: 32, 4>}, {pipeline_mode = #tpu.pipeline_mode<synchronous>, transform_indices = @transform_2, window_bounds = array<i64: 1, 4>}, {transform_indices = @transform_3, window_bounds = array<i64: 16, 4>}]} {
    %c0 = arith.constant 0 : index
    %c0_0 = arith.constant 0 : index
    %0 = vector.load %arg1[%c0, %c0_0] : memref<16x32xf32, #tpu.memory_space<vmem>>, vector<16x32xf32>
    %c0_1 = arith.constant 0 : index
    %c0_2 = arith.constant 0 : index
    %1 = vector.load %arg2[%c0_1, %c0_2] : memref<32x4xf32, #tpu.memory_space<vmem>>, vector<32x4xf32>
    %cst = arith.constant dense<0.000000e+00> : vector<16x4xf32>
    %2 = tpu.matmul %0, %1, %cst {dimension_numbers = #tpu.dot_dimension_numbers<[1], [0], [0], [1], [0, 0, 1, 1], [], []>} : vector<16x32xf32>, vector<32x4xf32>, vector<16x4xf32> -> vector<16x4xf32>
    %c0_3 = arith.constant 0 : index
    %c0_4 = arith.constant 0 : index
    %3 = vector.load %arg3[%c0_3, %c0_4] : memref<1x4xf32, #tpu.memory_space<vmem>>, vector<1x4xf32>
    %4 = vector.broadcast %3 : vector<1x4xf32> to vector<16x4xf32>
    %5 = arith.addf %2, %4 : vector<16x4xf32>
    %c0_5 = arith.constant 0 : index
    %c0_6 = arith.constant 0 : index
    %6 = vector.load %arg4[%c0_5, %c0_6] : memref<16x4xf32, #tpu.memory_space<vmem>>, vector<16x4xf32>
    tpu.vector_store %arg4[%c0_5, %c0_6], %5 {strides = array<i32>} : memref<16x4xf32, #tpu.memory_space<vmem>>, vector<16x4xf32>,
    return
  }
  func.func @transform_0(%arg0: i32) -> (i32, i32) {
    %c0_i32 = arith.constant 0 : i32
    %c0_i32_0 = arith.constant 0 : i32
    return %arg0, %c0_i32 : i32, i32
  }
  func.func @transform_1(%arg0: i32) -> (i32, i32) {
    %c0_i32 = arith.constant 0 : i32
    %c0_i32_0 = arith.constant 0 : i32
    %c0_i32_1 = arith.constant 0 : i32
    return %c0_i32, %c0_i32_0 : i32, i32
  }
  func.func @transform_2(%arg0: i32) -> (i32, i32) {
    %c0_i32 = arith.constant 0 : i32
    %c0_i32_0 = arith.constant 0 : i32
    %c0_i32_1 = arith.constant 0 : i32
    return %c0_i32, %c0_i32_0 : i32, i32
  }
  func.func @transform_3(%arg0: i32) -> (i32, i32) {
    %c0_i32 = arith.constant 0 : i32
    %c0_i32_0 = arith.constant 0 : i32
    return %arg0, %c0_i32 : i32, i32
  }
}

</mosaic_0001>

<bundles_post_ra>
// kernel: mlp_rl_forward.4
= control target key start
LH: loop header
LB: loop body
LE: loop exit
PB: predicated region body
PF: predicated region fallthrough
CT: control target
= control target key end

     0   :  { %v332_v0 = vmov 0.0|0.0   ;;  %vm333_vm0 = vmmov 0   ;;  %v334_v4 = vmov 0.0   ;;  %vm32_vm1 = vcmask 261120   ;;  %s437_s1 = inlined_call_operand.vmem [shape: f32[32,128], index: 1, kind: input, shape index: {}]   ;;  %s438_s0 = inlined_call_operand.vmem [shape: f32[2,32], index: 0, kind: input, shape index: {}]   ;;  %s439_s3 = inlined_call_operand.vmem [shape: f32[128,128], index: 3, kind: input, shape index: {}]   ;;  %s440_s2 = inlined_call_operand.vmem [shape: f32[1,128], index: 2, kind: input, shape index: {}]   ;;  %s441_s4 = inlined_call_operand.vmem [shape: f32[1,128], index: 4, kind: input, shape index: {}]   ;;  %s442_s5 = inlined_call_operand.vmem [shape: f32[2,128], index: 5, kind: output, shape index: {}]  }
   0x1   :  { %291 = vmatprep.subr.bf16.mxu0 %v332_v0  ;;  %v21_v1 = vld [vmem:[%s437_s1] sm:$0xff]  ;;  %v22_v2 = vld [vmem:[%s437_s1 + $0x8] sm:$0xff]  ;;  %v23_v3 = vld [vmem:[%s437_s1 + $0x10] sm:$0xff]  ;;  %253 = vmatprep.mubr.msk.f32.mxu0 %vm333_vm0, %v334_v4 }
   0x2   :  { %v292_v5 = vpack.c.bf16 %v22_v2, %v21_v1  ;;  %v24_v6 = vld [vmem:[%s437_s1 + $0x18] sm:$0xff]  ;;  %297 = vmatprep.subr.bf16.mxu1 %v332_v0  ;;  %288 = vmatprep.mubr.msk.f32.mxu1 %vm333_vm0, %v334_v4  ;;  %v20_v8 = vld [vmem:[%s438_s0] sm:$0x3]  ;;  %v114_v10 = vld [vmem:[%s439_s3 + $0x8] sm:$0xff] }
   0x3   :  { %v295_v7 = vpack.c.bf16 %v24_v6, %v23_v3  ;;  %v113_v9 = vld [vmem:[%s439_s3] sm:$0xff]  ;;  %v115_v12 = vld [vmem:[%s439_s3 + $0x10] sm:$0xff]  ;;  %v116_v13 = vld [vmem:[%s439_s3 + $0x18] sm:$0xff] }
   0x4   :  { %293 = vmatpush3.bf16.msra.mxu0 %v292_v5  ;;  %v298_v11 = vpack.c.bf16 %v114_v10, %v113_v9  ;;  %v301_v14 = vpack.c.bf16 %v116_v13, %v115_v12  ;;  %v117_v15 = vld [vmem:[%s439_s3 + $0x20] sm:$0xff]  ;;  %v118_v16 = vld [vmem:[%s439_s3 + $0x28] sm:$0xff]  ;;  %v119_v18 = vld [vmem:[%s439_s3 + $0x30] sm:$0xff] }
   0x5   :  { %294 = vmatprep.subr.bf16.mxu0 %v332_v0  ;;  %v304_v17 = vpack.c.bf16 %v118_v16, %v117_v15  ;;  %v120_v19 = vld [vmem:[%s439_s3 + $0x38] sm:$0xff]  ;;  %v121_v21 = vld [vmem:[%s439_s3 + $0x40] sm:$0xff]  ;;  %v122_v22 = vld [vmem:[%s439_s3 + $0x48] sm:$0xff] }
   0x6   :  { %299 = vmatpush3.bf16.msra.mxu1 %v298_v11  ;;  %v307_v20 = vpack.c.bf16 %v120_v19, %v119_v18  ;;  %v310_v23 = vpack.c.bf16 %v122_v22, %v121_v21  ;;  %v123_v24 = vld [vmem:[%s439_s3 + $0x50] sm:$0xff]  ;;  %v124_v25 = vld [vmem:[%s439_s3 + $0x58] sm:$0xff]  ;;  %v125_v27 = vld [vmem:[%s439_s3 + $0x60] sm:$0xff] }
   0x7   :  { %300 = vmatprep.subr.bf16.mxu1 %v332_v0  ;;  %v313_v26 = vpack.c.bf16 %v124_v25, %v123_v24  ;;  %v126_v28 = vld [vmem:[%s439_s3 + $0x68] sm:$0xff]  ;;  %v127_v30 = vld [vmem:[%s439_s3 + $0x70] sm:$0xff]  ;;  %v128_v31 = vld [vmem:[%s439_s3 + $0x78] sm:$0xff] }
   0x8   :  { %296 = vmatpush3.bf16.msra.mxu0 %v295_v7  ;;  %v316_v29 = vpack.c.bf16 %v126_v28, %v125_v27  ;;  %v319_v32 = vpack.c.bf16 %v128_v31, %v127_v30  ;;  %v218_v33 = vld [vmem:[%s440_s2] ss:$0 sm:$0xff] }
   0x9   :  { %v221_v42 = vld [vmem:[%s441_s4] ss:$0 sm:$0xff] }
   0xa   :  { %302 = vmatpush3.bf16.msra.mxu1 %v301_v14 }
   0xb   :  { %254 = vmatmul.mubr.msk.f32.vlgmr.msra.gmra.mrb[0].mxu0 %vm32_vm1, %v20_v8  ;;  %303 = vmatprep.subr.bf16.mxu1 %v332_v0 }
   0xe   :  { %305 = vmatpush3.bf16.msra.mxu1 %v304_v17 }
   0xf   :  { %306 = vmatprep.subr.bf16.mxu1 %v332_v0 }
  0x12   :  { %308 = vmatpush3.bf16.msra.mxu1 %v307_v20 }
  0x13   :  { %309 = vmatprep.subr.bf16.mxu1 %v332_v0 }
  0x16   :  { %311 = vmatpush3.bf16.msra.mxu1 %v310_v23 }
  0x17   :  { %312 = vmatprep.subr.bf16.mxu1 %v332_v0 }
  0x1a   :  { %314 = vmatpush3.bf16.msra.mxu1 %v313_v26 }
  0x1b   :  { %315 = vmatprep.subr.bf16.mxu1 %v332_v0 }
  0x1e   :  { %317 = vmatpush3.bf16.msra.mxu1 %v316_v29 }
  0x1f   :  { %318 = vmatprep.subr.bf16.mxu1 %v332_v0 }
  0x22   :  { %320 = vmatpush3.bf16.msra.mxu1 %v319_v32 }
  0xde   :  { %v102_v34 = vpop.f32.mrb[0].mxu0 }
  0xdf   :  { %v103_v35 = vadd.f32 %v218_v33, %v102_v34  ;;  %v255_v36 = vpop.f32.mrb[1].mxu0 }
  0xe1   :  { %v220_v37 = vmul.f32 -1.442695, %v103_v35 }
  0xe3   :  { %324 = vpow2.f32 %v220_v37 }
  0xed   :  { %v325_v38 = vpop.eup %324 }
  0xee   :  { %v109_v39 = vadd.f32 1.0, %v325_v38 }
  0xf0   :  { %326 = vrcp.f32 %v109_v39 }
  0xfa   :  { %v327_v40 = vpop.eup %326 }
  0xfb   :  { %v112_v41 = vmul.f32 %v327_v40, %v103_v35 }
  0xfd   :  { %289 = vmatmul.mubr.f32.vlgmr.msra.gmra.mrb[0].mxu1 %v112_v41 }
 0x1d0   :  { %v202_v43 = vpop.f32.mrb[0].mxu1 }
 0x1d1   :  { %v203_v44 = vadd.f32 %v221_v42, %v202_v43  ;;  %v290_v45 = vpop.f32.mrb[1].mxu1 }
 0x1d3   :  { %v222_v46 = vmul.f32 -1.442695, %v203_v44 }
 0x1d5   :  { %328 = vpow2.f32 %v222_v46 }
 0x1df   :  { %v329_v47 = vpop.eup %328 }
 0x1e0   :  { %v209_v48 = vadd.f32 1.0, %v329_v47 }
 0x1e2   :  { %330 = vrcp.f32 %v209_v48 }
 0x1ec   :  { %v331_v49 = vpop.eup %330 }
 0x1ed   :  { %v212_v50 = vmul.f32 %v331_v49, %v203_v44 }
 0x1ef   :  { %213 = vst [vmem:[%s442_s5] sm:$0x3] %v212_v50 }

// kernel: mlp_rl_forward.7
= control target key start
LH: loop header
LB: loop body
LE: loop exit
PB: predicated region body
PF: predicated region fallthrough
CT: control target
= control target key end

     0   :  { %vm27_vm0 = vcmask 261120   ;;  %vm109_vm1 = vcmask 31744   ;;  %s191_s1 = inlined_call_operand.vmem [shape: f32[32,4], index: 1, kind: input, shape index: {}]   ;;  %s192_s0 = inlined_call_operand.vmem [shape: f32[16,32], index: 0, kind: input, shape index: {}]   ;;  %s193_s2 = inlined_call_operand.vmem [shape: f32[1,4], index: 2, kind: input, shape index: {}]   ;;  %s194_s3 = inlined_call_operand.vmem [shape: f32[16,4], index: 3, kind: output, shape index: {}]  }
   0x1   :  { %v16_v0 = vld [vmem:[%s191_s1] sm:$0xff]  ;;  %v17_v1 = vld [vmem:[%s191_s1 + $0x8] sm:$0xff]  ;;  %v18_v2 = vld [vmem:[%s191_s1 + $0x10] sm:$0xff] }
   0x2   :  { %v136_v3 = vpack.c.bf16 %v17_v1, %v16_v0  ;;  %v19_v4 = vld [vmem:[%s191_s1 + $0x18] sm:$0xff]  ;;  %v14_v5 = vld [vmem:[%s192_s0] sm:$0xff]  ;;  %v15_v7 = vld [vmem:[%s192_s0 + $0x8] sm:$0xff] }
   0x3   :  { %v140_v6 = vpack.c.bf16 %v19_v4, %v18_v2  ;;  %133 = vmatprep.mubr.msk.f32.mxu0 %vm27_vm0, %v14_v5  ;;  %v116_v8 = vld [vmem:[%s193_s2] ss:$0 sm:$0xff] }
   0x4   :  { %137 = vmatprep.subr.bf16.mxu0 %v136_v3 }
   0x5   :  { %139 = vmatpush3.bf16.msra.mxu0 %v136_v3 }
   0x6   :  { %141 = vmatprep.subr.bf16.mxu0 %v140_v6 }
   0x9   :  { %143 = vmatpush3.bf16.msra.mxu0 %v140_v6 }
   0xc   :  { %134 = vmatmul.mubr.msk.f32.vlgmr.msra.gmra.mrb[0].mxu0 %vm27_vm0, %v15_v7 }
  0xdf   :  { %v135_v9 = vpop.f32.mrb[0].mxu0 }
  0xe0   :  { %v106_v10 = vadd.f32 %v135_v9, %v116_v8  ;;  %v100_v11 = vpop.f32.mrb[1].mxu0 }
  0xe1   :  { %v101_v12 = vadd.f32 %v116_v8, %v100_v11 }
  0xe2   :  { %111 = vst.msk [vmem:[%s194_s3 + $0x8] sm:$0xff] %vm109_vm1, %v106_v10 }
  0xe3   :  { %110 = vst.msk [vmem:[%s194_s3] sm:$0xff] %vm109_vm1, %v101_v12 }

// kernel: mlp_rl_forward.5
= control target key start
LH: loop header
LB: loop body
LE: loop exit
PB: predicated region body
PF: predicated region fallthrough
CT: control target
= control target key end

     0   :  { %v2044_v0 = vmov 0.0|0.0   ;;  %vm2045_vm0 = vmmov 0   ;;  %v2046_v4 = vmov 0.0   ;;  %vm157_vm1 = vcmask 1043456   ;;  %s2449_s3 = inlined_call_operand.vmem [shape: f32[128,32], index: 3, kind: input, shape index: {}]   ;;  %s2450_s1 = inlined_call_operand.vmem [shape: f32[2,128], index: 1, kind: input, shape index: {}]   ;;  %s2451_s2 = inlined_call_operand.vmem [shape: f32[4,32], index: 2, kind: input, shape index: {}]   ;;  %s2452_s0 = inlined_call_operand.vmem [shape: f32[2,8,4], index: 0, kind: input, shape index: {}]   ;;  %s2453_s4 = inlined_call_operand.vmem [shape: f32[1,32], index: 4, kind: input, shape index: {}]   ;;  %s2454_s5 = inlined_call_operand.vmem [shape: f32[8,8], index: 5, kind: input, shape index: {}]   ;;  %s2455_s6 = inlined_call_operand.vmem [shape: f32[8,1], index: 6, kind: input, shape index: {}]   ;;  %s2456_s8 = inlined_call_operand.vmem [shape: f32[32,32], index: 8, kind: input, shape index: {}]   ;;  %s2457_s7 = inlined_call_operand.vmem [shape: f32[8,1], index: 7, kind: input, shape index: {}]   ;;  %s2458_s10 = inlined_call_operand.vmem [shape: f32[32,32], index: 10, kind: input, shape index: {}]   ;;  %s2459_s12 = inlined_call_operand.vmem [shape: f32[32,32], index: 12, kind: input, shape index: {}]   ;;  %s2460_s11 = inlined_call_operand.vmem [shape: f32[1,32], index: 11, kind: input, shape index: {}]   ;;  %s2461_s9 = inlined_call_operand.vmem [shape: f32[1,32], index: 9, kind: input, shape index: {}]   ;;  %s2462_s13 = inlined_call_operand.vmem [shape: f32[1,32], index: 13, kind: input, shape index: {}]   ;;  %s2463_s14 = inlined_call_operand.vmem [shape: f32[32,32], index: 14, kind: input, shape index: {}]   ;;  %s2464_s15 = inlined_call_operand.vmem [shape: f32[1,32], index: 15, kind: input, shape index: {}]   ;;  %s2465_s16 = inlined_call_operand.vmem [shape: f32[2,8,32], index: 16, kind: output, shape index: {}]  }
   0x1   :  { %2467 = sst [smem:[#allocation2_spill]] %s2449_s3  ;;  %1954 = vmatprep.subr.bf16.mxu0 %v2044_v0  ;;  %1813 = vmatprep.mubr.msk.f32.mxu0 %vm2045_vm0, %v2046_v4  ;;  %v53_v26 = vld [vmem:[%s2450_s1] sm:$0x3]  ;;  %vm153_vm2 = vcmask 31744   ;;  %v149_v29 = vlaneseq  ;;  %vm232_vm3 = vcmask 261120   ;;  %vm237_vm4 = vcmask 64512  }
   0x2   :  { %s2468_s23 = sld [smem:[#allocation2_spill]]  ;;  %1821 = vmatprep.subr.mxu1 %v2046_v4  ;;  %1823 = vmatprep.mubr.msk.f32.mxu1 %vm2045_vm0, %v2046_v4  ;;  %v148_v27 = vld [vmem:[%s2451_s2] sm:$0xf]  ;;  %v2047_v46 = vmov 0   ;;  %v416_v57 = vld [vmem:[%s2456_s8 + $0x8] sm:$0xff] }
   0x3   :  { %v147_v28 = vld [vmem:[%s2452_s0] sm:$0xff]  ;;  %v150_v30 = vshrl.u32 %v149_v29, 7  ;;  %2030 = vset.pattern.permute.xlu0 %v2047_v46  ;;  %2031 = vset.pattern.permute.xlu1 %v2047_v46 }
   0x4   :  { %v1671_v31 = vld [vmem:[%s2453_s4] ss:$0 sm:$0xff] }
   0x5   :  { %v151_v32 = vsub.s32 0, %v150_v30  ;;  %v913_v33 = vsub.s32 1, %v150_v30  ;;  %v2220_v44 = vld [vmem:[%s2454_s5] sm:$0xff] }
   0x6   :  { %v2236_v55 = vld [vmem:[%s2455_s6] sm:$0xff] }
   0x7   :  { %v415_v56 = vld [vmem:[%s2456_s8] sm:$0xff] }
   0x8   :  { %v54_v1 = vld [vmem:[%s2468_s23] sm:$0xff]  ;;  %v55_v2 = vld [vmem:[%s2468_s23 + $0x8] sm:$0xff]  ;;  %v56_v3 = vld [vmem:[%s2468_s23 + $0x10] sm:$0xff]  ;;  %v2245_v58 = vpack.c.bf16 %v416_v57, %v415_v56 }
   0x9   :  { %v1955_v5 = vpack.c.bf16 %v55_v2, %v54_v1  ;;  %v57_v6 = vld [vmem:[%s2468_s23 + $0x18] sm:$0xff]  ;;  %v58_v8 = vld [vmem:[%s2468_s23 + $0x20] sm:$0xff]  ;;  %v59_v9 = vld [vmem:[%s2468_s23 + $0x28] sm:$0xff] }
   0xa   :  { %v1958_v7 = vpack.c.bf16 %v57_v6, %v56_v3  ;;  %v1961_v10 = vpack.c.bf16 %v59_v9, %v58_v8  ;;  %v60_v11 = vld [vmem:[%s2468_s23 + $0x30] sm:$0xff]  ;;  %v61_v12 = vld [vmem:[%s2468_s23 + $0x38] sm:$0xff]  ;;  %v62_v14 = vld [vmem:[%s2468_s23 + $0x40] sm:$0xff] }
   0xb   :  { %1956 = vmatpush3.bf16.msra.mxu0 %v1955_v5  ;;  %v1964_v13 = vpack.c.bf16 %v61_v12, %v60_v11  ;;  %v63_v15 = vld [vmem:[%s2468_s23 + $0x48] sm:$0xff]  ;;  %v64_v17 = vld [vmem:[%s2468_s23 + $0x50] sm:$0xff]  ;;  %v65_v18 = vld [vmem:[%s2468_s23 + $0x58] sm:$0xff] }
   0xc   :  { %1957 = vmatprep.subr.bf16.mxu0 %v2044_v0  ;;  %v1967_v16 = vpack.c.bf16 %v63_v15, %v62_v14  ;;  %v1970_v19 = vpack.c.bf16 %v65_v18, %v64_v17  ;;  %v66_v20 = vld [vmem:[%s2468_s23 + $0x60] sm:$0xff]  ;;  %v67_v21 = vld [vmem:[%s2468_s23 + $0x68] sm:$0xff]  ;;  %v68_v23 = vld [vmem:[%s2468_s23 + $0x70] sm:$0xff] }
   0xd   :  { %v1973_v22 = vpack.c.bf16 %v67_v21, %v66_v20  ;;  %v69_v24 = vld [vmem:[%s2468_s23 + $0x78] sm:$0xff]  ;;  %v417_v1 = vld [vmem:[%s2456_s8 + $0x10] sm:$0xff]  ;;  %v2260_v5 = vld [vmem:[%s2457_s7] sm:$0xff] }
   0xe   :  { %v1976_v25 = vpack.c.bf16 %v69_v24, %v68_v23  ;;  %v418_v2 = vld [vmem:[%s2456_s8 + $0x18] sm:$0xff]  ;;  %v499_v9 = vld [vmem:[%s2458_s10] sm:$0xff]  ;;  %v501_v15 = vld [vmem:[%s2458_s10 + $0x10] sm:$0xff] }
   0xf   :  { %1959 = vmatpush3.bf16.msra.mxu0 %v1958_v7  ;;  %v2255_v3 = vpack.c.bf16 %v418_v2, %v417_v1  ;;  %v580_v18 = vld [vmem:[%s2459_s12] sm:$0xff]  ;;  %v582_v21 = vld [vmem:[%s2459_s12 + $0x10] sm:$0xff] }
  0x10   :  { %1960 = vmatprep.subr.bf16.mxu0 %v2044_v0  ;;  %v910_v57 = vld [vmem:[%s2451_s2] sm:$0xf] }
  0x13   :  { %1962 = vmatpush3.bf16.msra.mxu0 %v1961_v10  ;;  %v500_v10 = vld [vmem:[%s2458_s10 + $0x8] sm:$0xff] }
  0x14   :  { %1963 = vmatprep.subr.bf16.mxu0 %v2044_v0 }
  0x17   :  { %1965 = vmatpush3.bf16.msra.mxu0 %v1964_v13  ;;  %v2271_v13 = vpack.c.bf16 %v500_v10, %v499_v9 }
  0x18   :  { %1966 = vmatprep.subr.bf16.mxu0 %v2044_v0 }
  0x1b   :  { %1968 = vmatpush3.bf16.msra.mxu0 %v1967_v16  ;;  %v502_v16 = vld [vmem:[%s2458_s10 + $0x18] sm:$0xff] }
  0x1c   :  { %1969 = vmatprep.subr.bf16.mxu0 %v2044_v0  ;;  %v2284_v17 = vpack.c.bf16 %v502_v16, %v501_v15 }
  0x1f   :  { %1971 = vmatpush3.bf16.msra.mxu0 %v1970_v19  ;;  %v581_v19 = vld [vmem:[%s2459_s12 + $0x8] sm:$0xff] }
  0x20   :  { %1972 = vmatprep.subr.bf16.mxu0 %v2044_v0  ;;  %v2296_v20 = vpack.c.bf16 %v581_v19, %v580_v18 }
  0x23   :  { %1974 = vmatpush3.bf16.msra.mxu0 %v1973_v22  ;;  %v583_v22 = vld [vmem:[%s2459_s12 + $0x18] sm:$0xff] }
  0x24   :  { %1975 = vmatprep.subr.bf16.mxu0 %v2044_v0  ;;  %v2308_v23 = vpack.c.bf16 %v583_v22, %v582_v21 }
  0x27   :  { %1977 = vmatpush3.bf16.msra.mxu0 %v1976_v25 }
  0x28   :  { %1816 = vmatprep.subr.mxu0 %v2046_v4 }
  0x2a   :  { %1814 = vmatmul.mubr.f32.vlgmr.msra.gmra.mrb[0].mxu0 %v53_v26  ;;  %v2322_v26 = vld [vmem:[%s2460_s11] ss:$0 sm:$0xff] }
  0x2b   :  { %1817 = vmatpush3.msk.msra.mxu0 %vm157_vm1, %v148_v27  ;;  %1818 = vmatprep.mubr.msk.f32.mxu0 %vm2045_vm0, %v2046_v4 }
  0x2c   :  { %1864 = vmatprep.subr.mxu0 %v2046_v4 }
  0x2e   :  { %1819 = vmatmul.mubr.msk.f32.vlgmr.msra.gmra.mrb[2].mxu0 %vm153_vm2, %v147_v28  ;;  %v2327_v28 = vld [vmem:[%s2461_s9] ss:$0 sm:$0xff] }
  0x2f   :  { %1866 = vmatprep.mubr.msk.f32.mxu0 %vm2045_vm0, %v2046_v4 }
  0xfd   :  { %v143_v34 = vpop.f32.mrb[0].mxu0 }
  0xfe   :  { %v144_v35 = vadd.f32 %v1671_v31, %v143_v34  ;;  %v1815_v36 = vpop.f32.mrb[1].mxu0 }
 0x100   :  { %v152_v37 = vrot.slane %v144_v35, %v151_v32  ;;  %v2214_v38 = vrot.slane %v144_v35, %v913_v33  ;;  %v2337_v32 = vld [vmem:[%s2462_s13] ss:$0 sm:$0xff] }
 0x101   :  { %v227_v39 = vpop.f32.mrb[2].mxu0 }
 0x102   :  { %v228_v40 = vadd.f32 %v227_v39, %v152_v37  ;;  %v1820_v41 = vpop.f32.mrb[3].mxu0 }
 0x104   :  { %v231_v42 = vmax.f32 %v228_v40, 0.0 }
 0x106   :  { %v233_v43 = vsel %vm232_vm3, %v231_v42, 0.0 }
 0x107   :  { %234 = vadd.xlane.f32.xlu0 %v233_v43 }
 0x194   :  { %v235_v45 = vpop.xlane.xlu0 %234 }
 0x195   :  { %1822 = vmatpush3.msra.mxu1 %v235_v45 }
 0x196   :  { %1824 = vmatmul.mubr.msk.f32.vlgmr.msra.gmra.mrb[0].mxu1 %vm237_vm4, %v2220_v44  ;;  %1826 = vmatprep.subr.mxu1 %v2046_v4 }
 0x197   :  { %1828 = vmatprep.mubr.msk.f32.mxu1 %vm2045_vm0, %v2046_v4 }
 0x269   :  { %v307_v47 = vpop.f32.mrb[0].mxu1 }
 0x26a   :  { %v311_v48 = vmul.f32 0.0078125, %v307_v47  ;;  %v1825_v49 = vpop.f32.mrb[1].mxu1  ;;  %v822_v47 = vld [vmem:[%s2463_s14] sm:$0xff] }
 0x26b   :  { %v824_v49 = vld [vmem:[%s2463_s14 + $0x10] sm:$0xff] }
 0x26c   :  { %314 = vperm.xlu0 %2030, %v311_v48   ;;  %v823_v48 = vld [vmem:[%s2463_s14 + $0x8] sm:$0xff] }
 0x2eb   :  { %v315_v50 = vpop.permute.xlu0 %314 }
 0x2ec   :  { %v317_v51 = vsub.f32 %v231_v42, %v315_v50  ;;  %v2354_v50 = vpack.c.bf16 %v823_v48, %v822_v47 }
 0x2ee   :  { %v318_v52 = vmul.f32 %v317_v51, %v317_v51 }
 0x2f0   :  { %v319_v53 = vsel %vm232_vm3, %v318_v52, 0.0 }
 0x2f1   :  { %320 = vadd.xlane.f32.xlu1 %v319_v53 }
 0x302   :  { %404 = vperm.xlu1 %2031, %v2236_v55  }
 0x37e   :  { %v321_v54 = vpop.xlane.xlu1 %320 }
 0x37f   :  { %1827 = vmatpush3.msra.mxu1 %v321_v54 }
 0x380   :  { %1829 = vmatmul.mubr.msk.f32.vlgmr.msra.gmra.mrb[2].mxu1 %vm237_vm4, %v2220_v44  ;;  %1978 = vmatprep.subr.bf16.mxu1 %v2044_v0 }
 0x381   :  { %1839 = vmatprep.mubr.msk.f32.mxu1 %vm2045_vm0, %v2046_v4  ;;  %1980 = vmatpush3.bf16.msra.mxu1 %v2245_v58 }
 0x382   :  { %1981 = vmatprep.subr.bf16.mxu1 %v2044_v0  ;;  %v405_v6 = vpop.permute.xlu1 %404 }
 0x385   :  { %1983 = vmatpush3.bf16.msra.mxu1 %v2255_v3 }
 0x386   :  { %1984 = vmatprep.subr.bf16.mxu1 %v2044_v0 }
 0x453   :  { %v388_v59 = vpop.f32.mrb[2].mxu1 }
 0x454   :  { %v392_v60 = vmul.f32 0.0078125, %v388_v59  ;;  %v1830_v61 = vpop.f32.mrb[3].mxu1  ;;  %v1687_v59 = vld [vmem:[%s2452_s0 + $0x8] sm:$0xff] }
 0x456   :  { %v393_v62 = vadd.f32 1e-06, %v392_v60 }
 0x458   :  { %2032 = vrsqrt.f32 %v393_v62 }
 0x462   :  { %v2033_v63 = vpop.eup %2032 }
 0x463   :  { %397 = vperm.xlu1 %2031, %v2033_v63  }
 0x467   :  { %411 = vperm.xlu1 %2031, %v2260_v5  }
 0x4e2   :  { %v398_v7 = vpop.permute.xlu1 %397 }
 0x4e3   :  { %v400_v8 = vmul.f32 %v398_v7, %v317_v51  ;;  %v825_v51 = vld [vmem:[%s2463_s14 + $0x18] sm:$0xff] }
 0x4e4   :  { %v2360_v52 = vpack.c.bf16 %v825_v51, %v824_v49 }
 0x4e5   :  { %v407_v11 = vmul.f32 %v405_v6, %v400_v8 }
 0x4e6   :  { %v412_v12 = vpop.permute.xlu1 %411 }
 0x4e7   :  { %v2273_v14 = vadd.f32 %v412_v12, %v407_v11 }
 0x4e9   :  { %1840 = vmatmul.mubr.msk.f32.vlgmr.msra.gmra.mrb[4].mxu1 %vm232_vm3, %v2273_v14 }
 0x4ea   :  { %1986 = vmatpush3.bf16.msra.mxu1 %v2271_v13  ;;  %1850 = vmatprep.mubr.msk.f32.mxu1 %vm2045_vm0, %v2046_v4 }
 0x4eb   :  { %1987 = vmatprep.subr.bf16.mxu1 %v2044_v0 }
 0x4ee   :  { %1989 = vmatpush3.bf16.msra.mxu1 %v2284_v17 }
 0x4ef   :  { %1990 = vmatprep.subr.bf16.mxu1 %v2044_v0 }
 0x4f1   :  { %1851 = vmatmul.mubr.msk.f32.vlgmr.msra.gmra.mrb[6].mxu1 %vm232_vm3, %v2273_v14 }
 0x4f2   :  { %1992 = vmatpush3.bf16.msra.mxu1 %v2296_v20  ;;  %1861 = vmatprep.mubr.msk.f32.mxu1 %vm2045_vm0, %v2046_v4 }
 0x4f3   :  { %1993 = vmatprep.subr.bf16.mxu1 %v2044_v0 }
 0x4f6   :  { %1995 = vmatpush3.bf16.msra.mxu1 %v2308_v23 }
 0x4f7   :  { %1869 = vmatprep.subr.mxu1 %v2046_v4 }
 0x4f9   :  { %1862 = vmatmul.mubr.msk.f32.vlgmr.msra.gmra.mrb[8].mxu1 %vm232_vm3, %v2273_v14 }
 0x4fa   :  { %1871 = vmatprep.mubr.msk.f32.mxu1 %vm2045_vm0, %v2046_v4 }
 0x5bc   :  { %v495_v24 = vpop.f32.mrb[4].mxu1 }
 0x5bd   :  { %v1841_v25 = vpop.f32.mrb[5].mxu1  ;;  %v496_v31 = vadd.f32 %v2327_v28, %v495_v24 }
 0x5c4   :  { %v576_v27 = vpop.f32.mrb[6].mxu1 }
 0x5c5   :  { %v577_v29 = vadd.f32 %v2322_v26, %v576_v27  ;;  %v1852_v30 = vpop.f32.mrb[7].mxu1 }
 0x5c7   :  { %1865 = vmatpush3.xpose.msk.msra.mxu0 %vm232_vm3, %v577_v29 }
 0x5c8   :  { %1996 = vmatprep.subr.bf16.mxu0 %v2044_v0 }
 0x5ca   :  { %1867 = vmatmul.mubr.msk.f32.vlgmr.msra.gmra.mrb[4].mxu0 %vm232_vm3, %v496_v31 }
 0x5cb   :  { %1882 = vmatprep.mubr.msk.f32.mxu0 %vm2045_vm0, %v2046_v4  ;;  %1998 = vmatpush3.bf16.msra.mxu0 %v2354_v50 }
 0x5cc   :  { %v657_v33 = vpop.f32.mrb[8].mxu1  ;;  %1999 = vmatprep.subr.bf16.mxu0 %v2044_v0 }
 0x5cd   :  { %v658_v34 = vadd.f32 %v2337_v32, %v657_v33  ;;  %v1863_v35 = vpop.f32.mrb[9].mxu1 }
 0x5cf   :  { %1870 = vmatpush3.msra.mxu1 %v658_v34  ;;  %2001 = vmatpush3.bf16.msra.mxu0 %v2360_v52 }
 0x5d0   :  { %1885 = vmatprep.subr.mxu1 %v2046_v4  ;;  %1895 = vmatprep.subr.mxu0 %v2046_v4 }
 0x69d   :  { %v733_v36 = vpop.f32.mrb[4].mxu0 }
 0x69e   :  { %v737_v37 = vmul.f32 0.17677669, %v733_v36  ;;  %v1868_v39 = vpop.f32.mrb[5].mxu0 }
 0x6a0   :  { %v738_v40 = vsel %vm237_vm4, %v737_v37, -inf }
 0x6a1   :  { %739 = vmax.xlane.f32.xlu1 %v738_v40 }
 0x72e   :  { %v740_v41 = vpop.xlane.xlu1 %739 }
 0x72f   :  { %v741_v42 = vsub.f32 %v737_v37, %v740_v41 }
 0x731   :  { %v742_v43 = vmul.f32 1.442695, %v741_v42 }
 0x733   :  { %2034 = vpow2.f32 %v742_v43 }
 0x73d   :  { %v2035_v45 = vpop.eup %2034 }
 0x73e   :  { %v744_v46 = vsel %vm237_vm4, %v2035_v45, 0.0 }
 0x73f   :  { %745 = vadd.xlane.f32.xlu0 %v744_v46 }
 0x7cc   :  { %v746_v53 = vpop.xlane.xlu0 %745 }
 0x7cd   :  { %2036 = vrcp.f32 %v746_v53 }
 0x7d7   :  { %v2037_v54 = vpop.eup %2036 }
 0x7d8   :  { %v748_v56 = vmul.f32 %v2037_v54, %v2035_v45 }
 0x7da   :  { %1872 = vmatmul.mubr.msk.f32.vlgmr.msra.gmra.mrb[10].mxu1 %vm237_vm4, %v748_v56 }
 0x7db   :  { %1886 = vmatpush3.msk.msra.mxu1 %vm157_vm1, %v910_v57  ;;  %1887 = vmatprep.mubr.msk.f32.mxu1 %vm2045_vm0, %v2046_v4 }
 0x7dc   :  { %1890 = vmatprep.subr.mxu1 %v2046_v4 }
 0x7de   :  { %1888 = vmatmul.mubr.msk.f32.vlgmr.msra.gmra.mrb[12].mxu1 %vm153_vm2, %v1687_v59 }
 0x7df   :  { %1892 = vmatprep.mubr.msk.f32.mxu1 %vm2045_vm0, %v2046_v4 }
 0x8ad   :  { %v818_v60 = vpop.f32.mrb[10].mxu1 }
 0x8ae   :  { %v1873_v61 = vpop.f32.mrb[11].mxu1  ;;  %1883 = vmatmul.mubr.msk.f32.vlgmr.msra.gmra.mrb[6].mxu0 %vm232_vm3, %v818_v60 }
 0x8af   :  { %1897 = vmatprep.mubr.msk.f32.mxu0 %vm2045_vm0, %v2046_v4 }
 0x8b1   :  { %v987_v62 = vpop.f32.mrb[12].mxu1 }
 0x8b2   :  { %v988_v63 = vadd.f32 %v987_v62, %v2214_v38  ;;  %v1889_v1 = vpop.f32.mrb[13].mxu1  ;;  %v2396_v38 = vld [vmem:[%s2464_s15] ss:$0 sm:$0xff] }
 0x8b4   :  { %v991_v2 = vmax.f32 %v988_v63, 0.0 }
 0x8b6   :  { %v992_v6 = vsel %vm232_vm3, %v991_v2, 0.0 }
 0x8b7   :  { %993 = vadd.xlane.f32.xlu1 %v992_v6 }
 0x944   :  { %v994_v7 = vpop.xlane.xlu1 %993 }
 0x945   :  { %1891 = vmatpush3.msra.mxu1 %v994_v7 }
 0x946   :  { %1893 = vmatmul.mubr.msk.f32.vlgmr.msra.gmra.mrb[14].mxu1 %vm237_vm4, %v2220_v44  ;;  %2002 = vmatprep.subr.bf16.mxu1 %v2044_v0 }
 0x947   :  { %2004 = vmatpush3.bf16.msra.mxu1 %v2245_v58  ;;  %1908 = vmatprep.mubr.msk.f32.mxu1 %vm2045_vm0, %v2046_v4 }
 0x948   :  { %2005 = vmatprep.subr.bf16.mxu1 %v2044_v0 }
 0x94b   :  { %2007 = vmatpush3.bf16.msra.mxu1 %v2255_v3 }
 0x94c   :  { %2014 = vmatprep.subr.bf16.mxu1 %v2044_v0 }
 0x981   :  { %v902_v8 = vpop.f32.mrb[6].mxu0 }
 0x982   :  { %v903_v9 = vadd.f32 %v2396_v38, %v902_v8  ;;  %v1884_v10 = vpop.f32.mrb[7].mxu0 }
 0x984   :  { %v906_v58 = vadd.f32 %v903_v9, %v2273_v14 }
 0x986   :  { %907 = vst.msk [vmem:[%s2465_s16] sm:$0xff] %vm232_vm3, %v906_v58 }
 0xa19   :  { %v1065_v11 = vpop.f32.mrb[14].mxu1 }
 0xa1a   :  { %v1069_v3 = vmul.f32 0.0078125, %v1065_v11  ;;  %v1894_v12 = vpop.f32.mrb[15].mxu1 }
 0xa1c   :  { %1072 = vperm.xlu1 %2031, %v1069_v3  }
 0xa20   :  { %1162 = vperm.xlu1 %2031, %v2236_v55  }
 0xa24   :  { %1169 = vperm.xlu1 %2031, %v2260_v5  }
 0xa9b   :  { %v1073_v15 = vpop.permute.xlu1 %1072 }
 0xa9c   :  { %v1075_v16 = vsub.f32 %v991_v2, %v1073_v15 }
 0xa9e   :  { %v1076_v18 = vmul.f32 %v1075_v16, %v1075_v16 }
 0xaa0   :  { %v1077_v19 = vsel %vm232_vm3, %v1076_v18, 0.0 }
 0xaa1   :  { %1078 = vadd.xlane.f32.xlu0 %v1077_v19 }
 0xb2e   :  { %v1079_v14 = vpop.xlane.xlu0 %1078 }
 0xb2f   :  { %1896 = vmatpush3.msra.mxu0 %v1079_v14 }
 0xb30   :  { %1898 = vmatmul.mubr.msk.f32.vlgmr.msra.gmra.mrb[8].mxu0 %vm237_vm4, %v2220_v44  ;;  %2008 = vmatprep.subr.bf16.mxu0 %v2044_v0  ;;  %v1163_v44 = vpop.permute.xlu1 %1162 }
 0xb31   :  { %2010 = vmatpush3.bf16.msra.mxu0 %v2271_v13  ;;  %1919 = vmatprep.mubr.msk.f32.mxu0 %vm2045_vm0, %v2046_v4 }
 0xb32   :  { %2011 = vmatprep.subr.bf16.mxu0 %v2044_v0 }
 0xb34   :  { %v1170_v29 = vpop.permute.xlu1 %1169 }
 0xb35   :  { %2013 = vmatpush3.bf16.msra.mxu0 %v2284_v17 }
 0xb36   :  { %1933 = vmatprep.subr.mxu0 %v2046_v4 }
 0xc03   :  { %v1146_v55 = vpop.f32.mrb[8].mxu0 }
 0xc04   :  { %v1150_v5 = vmul.f32 0.0078125, %v1146_v55  ;;  %v1899_v21 = vpop.f32.mrb[9].mxu0 }
 0xc06   :  { %v1151_v22 = vadd.f32 1e-06, %v1150_v5 }
 0xc08   :  { %2038 = vrsqrt.f32 %v1151_v22 }
 0xc12   :  { %v2039_v24 = vpop.eup %2038 }
 0xc13   :  { %1155 = vperm.xlu0 %2030, %v2039_v24  }
 0xc92   :  { %v1156_v25 = vpop.permute.xlu0 %1155 }
 0xc93   :  { %v1158_v27 = vmul.f32 %v1156_v25, %v1075_v16 }
 0xc95   :  { %v1165_v13 = vmul.f32 %v1163_v44, %v1158_v27 }
 0xc97   :  { %v1172_v30 = vadd.f32 %v1170_v29, %v1165_v13 }
 0xc99   :  { %1909 = vmatmul.mubr.msk.f32.vlgmr.msra.gmra.mrb[16].mxu1 %vm232_vm3, %v1172_v30  ;;  %1920 = vmatmul.mubr.msk.f32.vlgmr.msra.gmra.mrb[10].mxu0 %vm232_vm3, %v1172_v30 }
 0xc9a   :  { %2016 = vmatpush3.bf16.msra.mxu1 %v2296_v20  ;;  %1930 = vmatprep.mubr.msk.f32.mxu1 %vm2045_vm0, %v2046_v4 }
 0xc9b   :  { %2017 = vmatprep.subr.bf16.mxu1 %v2044_v0  ;;  %1935 = vmatprep.mubr.msk.f32.mxu0 %vm2045_vm0, %v2046_v4 }
 0xc9e   :  { %2019 = vmatpush3.bf16.msra.mxu1 %v2308_v23 }
 0xc9f   :  { %2020 = vmatprep.subr.bf16.mxu1 %v2044_v0 }
 0xca1   :  { %1931 = vmatmul.mubr.msk.f32.vlgmr.msra.gmra.mrb[18].mxu1 %vm232_vm3, %v1172_v30 }
 0xca2   :  { %2022 = vmatpush3.bf16.msra.mxu1 %v2354_v50  ;;  %1951 = vmatprep.mubr.msk.f32.mxu1 %vm2045_vm0, %v2046_v4 }
 0xca3   :  { %2023 = vmatprep.subr.bf16.mxu1 %v2044_v0 }
 0xca6   :  { %2025 = vmatpush3.bf16.msra.mxu1 %v2360_v52 }
 0xd6c   :  { %v1253_v17 = vpop.f32.mrb[16].mxu1  ;;  %v1334_v20 = vpop.f32.mrb[10].mxu0 }
 0xd6d   :  { %v1335_v31 = vadd.f32 %v2322_v26, %v1334_v20  ;;  %v1910_v33 = vpop.f32.mrb[17].mxu1  ;;  %v1921_v34 = vpop.f32.mrb[11].mxu0  ;;  %v1254_v23 = vadd.f32 %v2327_v28, %v1253_v17 }
 0xd6f   :  { %1934 = vmatpush3.xpose.msk.msra.mxu0 %vm232_vm3, %v1335_v31 }
 0xd70   :  { %1938 = vmatprep.subr.mxu0 %v2046_v4 }
 0xd72   :  { %1936 = vmatmul.mubr.msk.f32.vlgmr.msra.gmra.mrb[12].mxu0 %vm232_vm3, %v1254_v23 }
 0xd73   :  { %1940 = vmatprep.mubr.msk.f32.mxu0 %vm2045_vm0, %v2046_v4 }
 0xd74   :  { %v1415_v0 = vpop.f32.mrb[18].mxu1 }
 0xd75   :  { %v1416_v35 = vadd.f32 %v2337_v32, %v1415_v0  ;;  %v1932_v36 = vpop.f32.mrb[19].mxu1 }
 0xd77   :  { %1939 = vmatpush3.msra.mxu0 %v1416_v35 }
 0xe45   :  { %v1491_v37 = vpop.f32.mrb[12].mxu0 }
 0xe46   :  { %v1495_v26 = vmul.f32 0.17677669, %v1491_v37  ;;  %v1937_v39 = vpop.f32.mrb[13].mxu0 }
 0xe48   :  { %v1496_v40 = vsel %vm237_vm4, %v1495_v26, -inf }
 0xe49   :  { %1497 = vmax.xlane.f32.xlu1 %v1496_v40 }
 0xed6   :  { %v1498_v41 = vpop.xlane.xlu1 %1497 }
 0xed7   :  { %v1499_v28 = vsub.f32 %v1495_v26, %v1498_v41 }
 0xed9   :  { %v1500_v42 = vmul.f32 1.442695, %v1499_v28 }
 0xedb   :  { %2040 = vpow2.f32 %v1500_v42 }
 0xee5   :  { %v2041_v43 = vpop.eup %2040 }
 0xee6   :  { %v1502_v45 = vsel %vm237_vm4, %v2041_v43, 0.0 }
 0xee7   :  { %1503 = vadd.xlane.f32.xlu0 %v1502_v45 }
 0xf74   :  { %v1504_v4 = vpop.xlane.xlu0 %1503 }
 0xf75   :  { %2042 = vrcp.f32 %v1504_v4 }
 0xf7f   :  { %v2043_v46 = vpop.eup %2042 }
 0xf80   :  { %v1506_v32 = vmul.f32 %v2043_v46, %v2041_v43 }
 0xf82   :  { %1941 = vmatmul.mubr.msk.f32.vlgmr.msra.gmra.mrb[14].mxu0 %vm237_vm4, %v1506_v32 }
0x1055   :  { %v1576_v47 = vpop.f32.mrb[14].mxu0 }
0x1056   :  { %v1942_v48 = vpop.f32.mrb[15].mxu0  ;;  %1952 = vmatmul.mubr.msk.f32.vlgmr.msra.gmra.mrb[20].mxu1 %vm232_vm3, %v1576_v47 }
0x1129   :  { %v1660_v49 = vpop.f32.mrb[20].mxu1 }
0x112a   :  { %v1661_v50 = vadd.f32 %v2396_v38, %v1660_v49  ;;  %v1953_v51 = vpop.f32.mrb[21].mxu1 }
0x112c   :  { %v1664_v52 = vadd.f32 %v1661_v50, %v1172_v30 }
0x112e   :  { %1703 = vst.msk [vmem:[%s2465_s16 + $0x8] sm:$0xff] %vm232_vm3, %v1664_v52 }

// kernel: mlp_rl_forward.6
= control target key start
LH: loop header
LB: loop body
LE: loop exit
PB: predicated region body
PF: predicated region fallthrough
CT: control target
= control target key end

     0   :  { %v2070_v0 = vmov 0.0|0.0   ;;  %vm2071_vm0 = vmmov 0   ;;  %v2072_v6 = vmov 0.0   ;;  %vm156_vm1 = vcmask 261120   ;;  %s2489_s3 = inlined_call_operand.vmem [shape: f32[128,32], index: 3, kind: input, shape index: {}]   ;;  %s2490_s2 = inlined_call_operand.vmem [shape: f32[32,32], index: 2, kind: input, shape index: {}]   ;;  %s2491_s0 = inlined_call_operand.vmem [shape: f32[2,8,32], index: 0, kind: input, shape index: {}]   ;;  %s2492_s1 = inlined_call_operand.vmem [shape: f32[2,128], index: 1, kind: input, shape index: {}]   ;;  %s2493_s4 = inlined_call_operand.vmem [shape: f32[1,32], index: 4, kind: input, shape index: {}]   ;;  %s2494_s5 = inlined_call_operand.vmem [shape: f32[8,8], index: 5, kind: input, shape index: {}]   ;;  %s2495_s6 = inlined_call_operand.vmem [shape: f32[8,1], index: 6, kind: input, shape index: {}]   ;;  %s2496_s8 = inlined_call_operand.vmem [shape: f32[32,32], index: 8, kind: input, shape index: {}]   ;;  %s2497_s12 = inlined_call_operand.vmem [shape: f32[32,32], index: 12, kind: input, shape index: {}]   ;;  %s2498_s7 = inlined_call_operand.vmem [shape: f32[8,1], index: 7, kind: input, shape index: {}]   ;;  %s2499_s10 = inlined_call_operand.vmem [shape: f32[32,32], index: 10, kind: input, shape index: {}]   ;;  %s2500_s11 = inlined_call_operand.vmem [shape: f32[1,32], index: 11, kind: input, shape index: {}]   ;;  %s2501_s9 = inlined_call_operand.vmem [shape: f32[1,32], index: 9, kind: input, shape index: {}]   ;;  %s2502_s13 = inlined_call_operand.vmem [shape: f32[1,32], index: 13, kind: input, shape index: {}]   ;;  %s2503_s14 = inlined_call_operand.vmem [shape: f32[32,32], index: 14, kind: input, shape index: {}]   ;;  %s2504_s15 = inlined_call_operand.vmem [shape: f32[1,32], index: 15, kind: input, shape index: {}]   ;;  %s2505_s16 = inlined_call_operand.vmem [shape: f32[2,8,32], index: 16, kind: output, shape index: {}]  }
   0x1   :  { %2507 = sst [smem:[#allocation2_spill]] %s2489_s3  ;;  %1968 = vmatprep.subr.bf16.mxu0 %v2070_v0  ;;  %1992 = vmatprep.subr.bf16.mxu1 %v2070_v0  ;;  %v148_v10 = vld [vmem:[%s2490_s2] sm:$0xff]  ;;  %v149_v11 = vld [vmem:[%s2490_s2 + $0x8] sm:$0xff]  ;;  %v150_v13 = vld [vmem:[%s2490_s2 + $0x10] sm:$0xff]  ;;  %v152_v36 = vlaneseq  ;;  %vm235_vm2 = vcmask 64512   ;;  %v2073_v51 = vmov 0  }
   0x2   :  { %s2508_s23 = sld [smem:[#allocation2_spill]]  ;;  %1815 = vmatprep.mubr.msk.f32.mxu0 %vm2071_vm0, %v2072_v6  ;;  %1826 = vmatprep.mubr.msk.f32.mxu1 %vm2071_vm0, %v2072_v6  ;;  %v2190_v12 = vpack.c.bf16 %v149_v11, %v148_v10  ;;  %v151_v14 = vld [vmem:[%s2490_s2 + $0x18] sm:$0xff]  ;;  %v147_v22 = vld [vmem:[%s2491_s0] sm:$0xff]  ;;  %v414_v62 = vld [vmem:[%s2496_s8 + $0x8] sm:$0xff] }
   0x3   :  { %v2206_v18 = vpack.c.bf16 %v151_v14, %v150_v13  ;;  %v53_v33 = vld [vmem:[%s2492_s1] sm:$0x3]  ;;  %v153_v37 = vshrl.u32 %v152_v36, 7  ;;  %2056 = vset.pattern.permute.xlu0 %v2073_v51  ;;  %2057 = vset.pattern.permute.xlu1 %v2073_v51  ;;  %v415_v10 = vld [vmem:[%s2496_s8 + $0x10] sm:$0xff]  ;;  %v416_v11 = vld [vmem:[%s2496_s8 + $0x18] sm:$0xff] }
   0x4   :  { %1994 = vmatpush3.bf16.msra.mxu1 %v2190_v12  ;;  %v1669_v38 = vld [vmem:[%s2493_s4] ss:$0 sm:$0xff]  ;;  %v2306_v13 = vpack.c.bf16 %v416_v11, %v415_v10  ;;  %v580_v14 = vld [vmem:[%s2497_s12 + $0x10] sm:$0xff] }
   0x5   :  { %1995 = vmatprep.subr.bf16.mxu1 %v2070_v0  ;;  %v154_v39 = vsub.s32 0, %v153_v37  ;;  %v914_v40 = vsub.s32 1, %v153_v37  ;;  %v2261_v49 = vld [vmem:[%s2494_s5] sm:$0xff] }
   0x6   :  { %v2277_v60 = vld [vmem:[%s2495_s6] sm:$0xff] }
   0x7   :  { %v413_v61 = vld [vmem:[%s2496_s8] sm:$0xff] }
   0x8   :  { %v54_v1 = vld [vmem:[%s2508_s23] sm:$0xff]  ;;  %v55_v2 = vld [vmem:[%s2508_s23 + $0x8] sm:$0xff]  ;;  %v56_v3 = vld [vmem:[%s2508_s23 + $0x10] sm:$0xff]  ;;  %1997 = vmatpush3.bf16.msra.mxu1 %v2206_v18 }
   0x9   :  { %v1969_v4 = vpack.c.bf16 %v55_v2, %v54_v1  ;;  %v57_v5 = vld [vmem:[%s2508_s23 + $0x18] sm:$0xff]  ;;  %v58_v8 = vld [vmem:[%s2508_s23 + $0x20] sm:$0xff]  ;;  %v59_v9 = vld [vmem:[%s2508_s23 + $0x28] sm:$0xff]  ;;  %1829 = vmatprep.subr.mxu1 %v2072_v6  ;;  %v2289_v1 = vpack.c.bf16 %v414_v62, %v413_v61 }
   0xa   :  { %v1972_v7 = vpack.c.bf16 %v57_v5, %v56_v3  ;;  %v1975_v15 = vpack.c.bf16 %v59_v9, %v58_v8  ;;  %v60_v16 = vld [vmem:[%s2508_s23 + $0x30] sm:$0xff]  ;;  %v61_v17 = vld [vmem:[%s2508_s23 + $0x38] sm:$0xff]  ;;  %v62_v20 = vld [vmem:[%s2508_s23 + $0x40] sm:$0xff] }
   0xb   :  { %1970 = vmatpush3.bf16.msra.mxu0 %v1969_v4  ;;  %v1978_v19 = vpack.c.bf16 %v61_v17, %v60_v16  ;;  %v63_v21 = vld [vmem:[%s2508_s23 + $0x48] sm:$0xff]  ;;  %1827 = vmatmul.mubr.msk.f32.vlgmr.msra.gmra.mrb[0].mxu1 %vm156_vm1, %v147_v22  ;;  %v64_v24 = vld [vmem:[%s2508_s23 + $0x50] sm:$0xff]  ;;  %v65_v25 = vld [vmem:[%s2508_s23 + $0x58] sm:$0xff] }
   0xc   :  { %1971 = vmatprep.subr.bf16.mxu0 %v2070_v0  ;;  %v1981_v23 = vpack.c.bf16 %v63_v21, %v62_v20  ;;  %1831 = vmatprep.mubr.msk.f32.mxu1 %vm2071_vm0, %v2072_v6  ;;  %v1984_v26 = vpack.c.bf16 %v65_v25, %v64_v24  ;;  %v66_v27 = vld [vmem:[%s2508_s23 + $0x60] sm:$0xff]  ;;  %v67_v28 = vld [vmem:[%s2508_s23 + $0x68] sm:$0xff]  ;;  %v68_v30 = vld [vmem:[%s2508_s23 + $0x70] sm:$0xff] }
   0xd   :  { %v1987_v29 = vpack.c.bf16 %v67_v28, %v66_v27  ;;  %v69_v31 = vld [vmem:[%s2508_s23 + $0x78] sm:$0xff]  ;;  %v578_v63 = vld [vmem:[%s2497_s12] sm:$0xff]  ;;  %v579_v2 = vld [vmem:[%s2497_s12 + $0x8] sm:$0xff] }
   0xe   :  { %v1990_v32 = vpack.c.bf16 %v69_v31, %v68_v30  ;;  %v2294_v3 = vpack.c.bf16 %v579_v2, %v578_v63  ;;  %v2317_v16 = vld [vmem:[%s2498_s7] sm:$0xff]  ;;  %v499_v28 = vld [vmem:[%s2499_s10 + $0x10] sm:$0xff]  ;;  %v1684_v2 = vld [vmem:[%s2491_s0 + $0x8] sm:$0xff] }
   0xf   :  { %1973 = vmatpush3.bf16.msra.mxu0 %v1972_v7  ;;  %v497_v22 = vld [vmem:[%s2499_s10] sm:$0xff] }
  0x10   :  { %1974 = vmatprep.subr.bf16.mxu0 %v2070_v0  ;;  %v2368_v37 = vld [vmem:[%s2501_s9] ss:$0 sm:$0xff] }
  0x13   :  { %1976 = vmatpush3.bf16.msra.mxu0 %v1975_v15  ;;  %v581_v15 = vld [vmem:[%s2497_s12 + $0x18] sm:$0xff] }
  0x14   :  { %1977 = vmatprep.subr.bf16.mxu0 %v2070_v0  ;;  %v2319_v17 = vpack.c.bf16 %v581_v15, %v580_v14 }
  0x17   :  { %1979 = vmatpush3.bf16.msra.mxu0 %v1978_v19 }
  0x18   :  { %1980 = vmatprep.subr.bf16.mxu0 %v2070_v0 }
  0x1b   :  { %1982 = vmatpush3.bf16.msra.mxu0 %v1981_v23  ;;  %v498_v23 = vld [vmem:[%s2499_s10 + $0x8] sm:$0xff] }
  0x1c   :  { %1983 = vmatprep.subr.bf16.mxu0 %v2070_v0 }
  0x1f   :  { %1985 = vmatpush3.bf16.msra.mxu0 %v1984_v26  ;;  %v2332_v26 = vpack.c.bf16 %v498_v23, %v497_v22 }
  0x20   :  { %1986 = vmatprep.subr.bf16.mxu0 %v2070_v0 }
  0x23   :  { %1988 = vmatpush3.bf16.msra.mxu0 %v1987_v29  ;;  %v500_v29 = vld [vmem:[%s2499_s10 + $0x18] sm:$0xff] }
  0x24   :  { %1989 = vmatprep.subr.bf16.mxu0 %v2070_v0  ;;  %v2347_v30 = vpack.c.bf16 %v500_v29, %v499_v28 }
  0x27   :  { %1991 = vmatpush3.bf16.msra.mxu0 %v1990_v32 }
  0x28   :  { %2010 = vmatprep.subr.bf16.mxu0 %v2070_v0 }
  0x2a   :  { %1816 = vmatmul.mubr.f32.vlgmr.msra.gmra.mrb[0].mxu0 %v53_v33 }
  0x2b   :  { %1869 = vmatprep.mubr.msk.f32.mxu0 %vm2071_vm0, %v2072_v6  ;;  %2012 = vmatpush3.bf16.msra.mxu0 %v2294_v3 }
  0x2c   :  { %2013 = vmatprep.subr.bf16.mxu0 %v2070_v0 }
  0x2f   :  { %2015 = vmatpush3.bf16.msra.mxu0 %v2319_v17 }
  0x30   :  { %2016 = vmatprep.subr.bf16.mxu0 %v2070_v0 }
  0xde   :  { %v226_v34 = vpop.f32.mrb[0].mxu1 }
  0xdf   :  { %v1828_v35 = vpop.f32.mrb[1].mxu1 }
  0xe0   :  { %v2363_v35 = vld [vmem:[%s2500_s11] ss:$0 sm:$0xff] }
  0xfd   :  { %v143_v41 = vpop.f32.mrb[0].mxu0 }
  0xfe   :  { %v144_v42 = vadd.f32 %v1669_v38, %v143_v41  ;;  %v1817_v43 = vpop.f32.mrb[1].mxu0 }
 0x100   :  { %v155_v44 = vrot.slane %v144_v42, %v154_v39  ;;  %v2255_v45 = vrot.slane %v144_v42, %v914_v40  ;;  %v2374_v40 = vld [vmem:[%s2502_s13] ss:$0 sm:$0xff] }
 0x102   :  { %v227_v46 = vadd.f32 %v226_v34, %v155_v44 }
 0x104   :  { %v230_v47 = vmax.f32 %v227_v46, 0.0 }
 0x106   :  { %v231_v48 = vsel %vm156_vm1, %v230_v47, 0.0 }
 0x107   :  { %232 = vadd.xlane.f32.xlu0 %v231_v48 }
 0x194   :  { %v233_v50 = vpop.xlane.xlu0 %232 }
 0x195   :  { %1830 = vmatpush3.msra.mxu1 %v233_v50 }
 0x196   :  { %1832 = vmatmul.mubr.msk.f32.vlgmr.msra.gmra.mrb[2].mxu1 %vm235_vm2, %v2261_v49  ;;  %1834 = vmatprep.subr.mxu1 %v2072_v6 }
 0x197   :  { %1836 = vmatprep.mubr.msk.f32.mxu1 %vm2071_vm0, %v2072_v6 }
 0x269   :  { %v305_v52 = vpop.f32.mrb[2].mxu1 }
 0x26a   :  { %v309_v53 = vmul.f32 0.0078125, %v305_v52  ;;  %v1833_v54 = vpop.f32.mrb[3].mxu1 }
 0x26b   :  { %v820_v54 = vld [vmem:[%s2503_s14] sm:$0xff] }
 0x26c   :  { %312 = vperm.xlu0 %2056, %v309_v53  }
 0x2eb   :  { %v313_v55 = vpop.permute.xlu0 %312 }
 0x2ec   :  { %v315_v56 = vsub.f32 %v230_v47, %v313_v55  ;;  %v821_v55 = vld [vmem:[%s2503_s14 + $0x8] sm:$0xff] }
 0x2ee   :  { %v316_v57 = vmul.f32 %v315_v56, %v315_v56 }
 0x2f0   :  { %v317_v58 = vsel %vm156_vm1, %v316_v57, 0.0  ;;  %v2395_v57 = vpack.c.bf16 %v821_v55, %v820_v54 }
 0x2f1   :  { %318 = vadd.xlane.f32.xlu1 %v317_v58  ;;  %v823_v58 = vld [vmem:[%s2503_s14 + $0x18] sm:$0xff] }
 0x302   :  { %402 = vperm.xlu1 %2057, %v2277_v60  }
 0x37e   :  { %v319_v59 = vpop.xlane.xlu1 %318 }
 0x37f   :  { %1835 = vmatpush3.msra.mxu1 %v319_v59 }
 0x380   :  { %1837 = vmatmul.mubr.msk.f32.vlgmr.msra.gmra.mrb[4].mxu1 %vm235_vm2, %v2261_v49  ;;  %1998 = vmatprep.subr.bf16.mxu1 %v2070_v0 }
 0x381   :  { %1847 = vmatprep.mubr.msk.f32.mxu1 %vm2071_vm0, %v2072_v6  ;;  %2000 = vmatpush3.bf16.msra.mxu1 %v2289_v1 }
 0x382   :  { %2001 = vmatprep.subr.bf16.mxu1 %v2070_v0  ;;  %v403_v19 = vpop.permute.xlu1 %402 }
 0x385   :  { %2003 = vmatpush3.bf16.msra.mxu1 %v2306_v13 }
 0x386   :  { %2004 = vmatprep.subr.bf16.mxu1 %v2070_v0 }
 0x453   :  { %v386_v4 = vpop.f32.mrb[4].mxu1 }
 0x454   :  { %v390_v5 = vmul.f32 0.0078125, %v386_v4  ;;  %v1838_v7 = vpop.f32.mrb[5].mxu1 }
 0x456   :  { %v391_v8 = vadd.f32 1e-06, %v390_v5 }
 0x458   :  { %2058 = vrsqrt.f32 %v391_v8 }
 0x462   :  { %v2059_v9 = vpop.eup %2058 }
 0x463   :  { %395 = vperm.xlu1 %2057, %v2059_v9  }
 0x467   :  { %409 = vperm.xlu1 %2057, %v2317_v16  }
 0x4e2   :  { %v396_v20 = vpop.permute.xlu1 %395 }
 0x4e3   :  { %v398_v21 = vmul.f32 %v396_v20, %v315_v56  ;;  %v822_v56 = vld [vmem:[%s2503_s14 + $0x10] sm:$0xff] }
 0x4e4   :  { %v2401_v59 = vpack.c.bf16 %v823_v58, %v822_v56 }
 0x4e5   :  { %v405_v24 = vmul.f32 %v403_v19, %v398_v21 }
 0x4e6   :  { %v410_v25 = vpop.permute.xlu1 %409 }
 0x4e7   :  { %v2334_v27 = vadd.f32 %v410_v25, %v405_v24 }
 0x4e9   :  { %1848 = vmatmul.mubr.msk.f32.vlgmr.msra.gmra.mrb[6].mxu1 %vm156_vm1, %v2334_v27  ;;  %1870 = vmatmul.mubr.msk.f32.vlgmr.msra.gmra.mrb[2].mxu0 %vm156_vm1, %v2334_v27 }
 0x4ea   :  { %2006 = vmatpush3.bf16.msra.mxu1 %v2332_v26  ;;  %1858 = vmatprep.mubr.msk.f32.mxu1 %vm2071_vm0, %v2072_v6 }
 0x4eb   :  { %2007 = vmatprep.subr.bf16.mxu1 %v2070_v0  ;;  %1890 = vmatprep.mubr.msk.f32.mxu0 %vm2071_vm0, %v2072_v6 }
 0x4ec   :  { %2018 = vmatpush3.bf16.msra.mxu0 %v2395_v57 }
 0x4ed   :  { %2019 = vmatprep.subr.bf16.mxu0 %v2070_v0 }
 0x4ee   :  { %2009 = vmatpush3.bf16.msra.mxu1 %v2347_v30 }
 0x4ef   :  { %1872 = vmatprep.subr.mxu1 %v2072_v6 }
 0x4f0   :  { %2021 = vmatpush3.bf16.msra.mxu0 %v2401_v59 }
 0x4f1   :  { %1859 = vmatmul.mubr.msk.f32.vlgmr.msra.gmra.mrb[8].mxu1 %vm156_vm1, %v2334_v27  ;;  %2028 = vmatprep.subr.bf16.mxu0 %v2070_v0 }
 0x4f2   :  { %1874 = vmatprep.mubr.msk.f32.mxu1 %vm2071_vm0, %v2072_v6 }
 0x5bc   :  { %v493_v31 = vpop.f32.mrb[6].mxu1  ;;  %v655_v32 = vpop.f32.mrb[2].mxu0 }
 0x5bd   :  { %v1849_v33 = vpop.f32.mrb[7].mxu1  ;;  %v1871_v34 = vpop.f32.mrb[3].mxu0  ;;  %v494_v41 = vadd.f32 %v2368_v37, %v493_v31  ;;  %v656_v42 = vadd.f32 %v2374_v40, %v655_v32 }
 0x5c4   :  { %v574_v36 = vpop.f32.mrb[8].mxu1 }
 0x5c5   :  { %v575_v38 = vadd.f32 %v2363_v35, %v574_v36  ;;  %v1860_v39 = vpop.f32.mrb[9].mxu1 }
 0x5c7   :  { %1873 = vmatpush3.xpose.msk.msra.mxu1 %vm156_vm1, %v575_v38 }
 0x5c8   :  { %1877 = vmatprep.subr.mxu1 %v2072_v6 }
 0x5ca   :  { %1875 = vmatmul.mubr.msk.f32.vlgmr.msra.gmra.mrb[10].mxu1 %vm156_vm1, %v494_v41 }
 0x5cb   :  { %1878 = vmatpush3.msra.mxu1 %v656_v42  ;;  %1879 = vmatprep.mubr.msk.f32.mxu1 %vm2071_vm0, %v2072_v6 }
 0x5cc   :  { %2022 = vmatprep.subr.bf16.mxu1 %v2070_v0 }
 0x69d   :  { %v731_v43 = vpop.f32.mrb[10].mxu1 }
 0x69e   :  { %v735_v44 = vmul.f32 0.17677669, %v731_v43  ;;  %v1876_v46 = vpop.f32.mrb[11].mxu1 }
 0x6a0   :  { %v736_v47 = vsel %vm235_vm2, %v735_v44, -inf }
 0x6a1   :  { %737 = vmax.xlane.f32.xlu1 %v736_v47 }
 0x72e   :  { %v738_v48 = vpop.xlane.xlu1 %737 }
 0x72f   :  { %v739_v50 = vsub.f32 %v735_v44, %v738_v48 }
 0x731   :  { %v740_v51 = vmul.f32 1.442695, %v739_v50 }
 0x733   :  { %2060 = vpow2.f32 %v740_v51 }
 0x73d   :  { %v2061_v52 = vpop.eup %2060 }
 0x73e   :  { %v742_v53 = vsel %vm235_vm2, %v2061_v52, 0.0 }
 0x73f   :  { %743 = vadd.xlane.f32.xlu0 %v742_v53 }
 0x7cc   :  { %v744_v61 = vpop.xlane.xlu0 %743 }
 0x7cd   :  { %2062 = vrcp.f32 %v744_v61 }
 0x7d7   :  { %v2063_v62 = vpop.eup %2062 }
 0x7d8   :  { %v746_v63 = vmul.f32 %v2063_v62, %v2061_v52 }
 0x7da   :  { %1880 = vmatmul.mubr.msk.f32.vlgmr.msra.gmra.mrb[12].mxu1 %vm235_vm2, %v746_v63 }
 0x7db   :  { %2024 = vmatpush3.bf16.msra.mxu1 %v2190_v12  ;;  %1901 = vmatprep.mubr.msk.f32.mxu1 %vm2071_vm0, %v2072_v6 }
 0x7dc   :  { %2025 = vmatprep.subr.bf16.mxu1 %v2070_v0 }
 0x7df   :  { %2027 = vmatpush3.bf16.msra.mxu1 %v2206_v18 }
 0x7e0   :  { %1904 = vmatprep.subr.mxu1 %v2072_v6 }
 0x7e2   :  { %1902 = vmatmul.mubr.msk.f32.vlgmr.msra.gmra.mrb[14].mxu1 %vm156_vm1, %v1684_v2 }
 0x7e3   :  { %1906 = vmatprep.mubr.msk.f32.mxu1 %vm2071_vm0, %v2072_v6 }
 0x8ad   :  { %v816_v4 = vpop.f32.mrb[12].mxu1 }
 0x8ae   :  { %v1881_v12 = vpop.f32.mrb[13].mxu1  ;;  %1891 = vmatmul.mubr.msk.f32.vlgmr.msra.gmra.mrb[4].mxu0 %vm156_vm1, %v816_v4 }
 0x8af   :  { %2030 = vmatpush3.bf16.msra.mxu0 %v2289_v1  ;;  %1922 = vmatprep.mubr.msk.f32.mxu0 %vm2071_vm0, %v2072_v6  ;;  %v2436_v1 = vld [vmem:[%s2504_s15] ss:$0 sm:$0xff] }
 0x8b0   :  { %2031 = vmatprep.subr.bf16.mxu0 %v2070_v0 }
 0x8b3   :  { %2033 = vmatpush3.bf16.msra.mxu0 %v2306_v13 }
 0x8b4   :  { %2040 = vmatprep.subr.bf16.mxu0 %v2070_v0 }
 0x8b5   :  { %v985_v18 = vpop.f32.mrb[14].mxu1 }
 0x8b6   :  { %v986_v5 = vadd.f32 %v985_v18, %v2255_v45  ;;  %v1903_v7 = vpop.f32.mrb[15].mxu1 }
 0x8b8   :  { %v989_v8 = vmax.f32 %v986_v5, 0.0 }
 0x8ba   :  { %v990_v9 = vsel %vm156_vm1, %v989_v8, 0.0 }
 0x8bb   :  { %991 = vadd.xlane.f32.xlu1 %v990_v9 }
 0x948   :  { %v992_v10 = vpop.xlane.xlu1 %991 }
 0x949   :  { %1905 = vmatpush3.msra.mxu1 %v992_v10 }
 0x94a   :  { %1907 = vmatmul.mubr.msk.f32.vlgmr.msra.gmra.mrb[16].mxu1 %vm235_vm2, %v2261_v49  ;;  %1909 = vmatprep.subr.mxu1 %v2072_v6 }
 0x94b   :  { %1911 = vmatprep.mubr.msk.f32.mxu1 %vm2071_vm0, %v2072_v6 }
 0x981   :  { %v900_v45 = vpop.f32.mrb[4].mxu0 }
 0x982   :  { %v901_v11 = vadd.f32 %v2436_v1, %v900_v45  ;;  %v1892_v13 = vpop.f32.mrb[5].mxu0 }
 0x984   :  { %v904_v14 = vadd.f32 %v901_v11, %v2334_v27 }
 0x986   :  { %905 = vst.msk [vmem:[%s2505_s16] sm:$0xff] %vm156_vm1, %v904_v14 }
 0xa1d   :  { %v1063_v15 = vpop.f32.mrb[16].mxu1 }
 0xa1e   :  { %v1067_v19 = vmul.f32 0.0078125, %v1063_v15  ;;  %v1908_v20 = vpop.f32.mrb[17].mxu1 }
 0xa20   :  { %1070 = vperm.xlu1 %2057, %v1067_v19  }
 0xa24   :  { %1160 = vperm.xlu1 %2057, %v2277_v60  }
 0xa28   :  { %1167 = vperm.xlu1 %2057, %v2317_v16  }
 0xa9f   :  { %v1071_v21 = vpop.permute.xlu1 %1070 }
 0xaa0   :  { %v1073_v22 = vsub.f32 %v989_v8, %v1071_v21 }
 0xaa2   :  { %v1074_v23 = vmul.f32 %v1073_v22, %v1073_v22 }
 0xaa4   :  { %v1075_v24 = vsel %vm156_vm1, %v1074_v23, 0.0 }
 0xaa5   :  { %1076 = vadd.xlane.f32.xlu0 %v1075_v24 }
 0xb32   :  { %v1077_v25 = vpop.xlane.xlu0 %1076 }
 0xb33   :  { %1910 = vmatpush3.msra.mxu1 %v1077_v25 }
 0xb34   :  { %1912 = vmatmul.mubr.msk.f32.vlgmr.msra.gmra.mrb[18].mxu1 %vm235_vm2, %v2261_v49  ;;  %2034 = vmatprep.subr.bf16.mxu1 %v2070_v0  ;;  %v1161_v49 = vpop.permute.xlu1 %1160 }
 0xb35   :  { %2036 = vmatpush3.bf16.msra.mxu1 %v2332_v26  ;;  %1933 = vmatprep.mubr.msk.f32.mxu1 %vm2071_vm0, %v2072_v6 }
 0xb36   :  { %2037 = vmatprep.subr.bf16.mxu1 %v2070_v0 }
 0xb38   :  { %v1168_v33 = vpop.permute.xlu1 %1167 }
 0xb39   :  { %2039 = vmatpush3.bf16.msra.mxu1 %v2347_v30 }
 0xb3a   :  { %1947 = vmatprep.subr.mxu1 %v2072_v6 }
 0xc07   :  { %v1144_v60 = vpop.f32.mrb[18].mxu1 }
 0xc08   :  { %v1148_v16 = vmul.f32 0.0078125, %v1144_v60  ;;  %v1913_v27 = vpop.f32.mrb[19].mxu1 }
 0xc0a   :  { %v1149_v28 = vadd.f32 1e-06, %v1148_v16 }
 0xc0c   :  { %2064 = vrsqrt.f32 %v1149_v28 }
 0xc16   :  { %v2065_v29 = vpop.eup %2064 }
 0xc17   :  { %1153 = vperm.xlu0 %2056, %v2065_v29  }
 0xc96   :  { %v1154_v31 = vpop.permute.xlu0 %1153 }
 0xc97   :  { %v1156_v32 = vmul.f32 %v1154_v31, %v1073_v22 }
 0xc99   :  { %v1163_v26 = vmul.f32 %v1161_v49, %v1156_v32 }
 0xc9b   :  { %v1170_v34 = vadd.f32 %v1168_v33, %v1163_v26 }
 0xc9d   :  { %1923 = vmatmul.mubr.msk.f32.vlgmr.msra.gmra.mrb[6].mxu0 %vm156_vm1, %v1170_v34  ;;  %1934 = vmatmul.mubr.msk.f32.vlgmr.msra.gmra.mrb[20].mxu1 %vm156_vm1, %v1170_v34 }
 0xc9e   :  { %2042 = vmatpush3.bf16.msra.mxu0 %v2294_v3  ;;  %1944 = vmatprep.mubr.msk.f32.mxu0 %vm2071_vm0, %v2072_v6 }
 0xc9f   :  { %2043 = vmatprep.subr.bf16.mxu0 %v2070_v0  ;;  %1949 = vmatprep.mubr.msk.f32.mxu1 %vm2071_vm0, %v2072_v6 }
 0xca2   :  { %2045 = vmatpush3.bf16.msra.mxu0 %v2319_v17 }
 0xca3   :  { %2046 = vmatprep.subr.bf16.mxu0 %v2070_v0 }
 0xca5   :  { %1945 = vmatmul.mubr.msk.f32.vlgmr.msra.gmra.mrb[8].mxu0 %vm156_vm1, %v1170_v34 }
 0xca6   :  { %2048 = vmatpush3.bf16.msra.mxu0 %v2395_v57  ;;  %1965 = vmatprep.mubr.msk.f32.mxu0 %vm2071_vm0, %v2072_v6 }
 0xca7   :  { %2049 = vmatprep.subr.bf16.mxu0 %v2070_v0 }
 0xcaa   :  { %2051 = vmatpush3.bf16.msra.mxu0 %v2401_v59 }
 0xd70   :  { %v1251_v3 = vpop.f32.mrb[6].mxu0  ;;  %v1332_v30 = vpop.f32.mrb[20].mxu1 }
 0xd71   :  { %v1333_v36 = vadd.f32 %v2363_v35, %v1332_v30  ;;  %v1924_v38 = vpop.f32.mrb[7].mxu0  ;;  %v1935_v39 = vpop.f32.mrb[21].mxu1  ;;  %v1252_v17 = vadd.f32 %v2368_v37, %v1251_v3 }
 0xd73   :  { %1948 = vmatpush3.xpose.msk.msra.mxu1 %vm156_vm1, %v1333_v36 }
 0xd74   :  { %1952 = vmatprep.subr.mxu1 %v2072_v6 }
 0xd76   :  { %1950 = vmatmul.mubr.msk.f32.vlgmr.msra.gmra.mrb[22].mxu1 %vm156_vm1, %v1252_v17 }
 0xd77   :  { %1954 = vmatprep.mubr.msk.f32.mxu1 %vm2071_vm0, %v2072_v6 }
 0xd78   :  { %v1413_v0 = vpop.f32.mrb[8].mxu0 }
 0xd79   :  { %v1414_v41 = vadd.f32 %v2374_v40, %v1413_v0  ;;  %v1946_v42 = vpop.f32.mrb[9].mxu0 }
 0xd7b   :  { %1953 = vmatpush3.msra.mxu1 %v1414_v41 }
 0xe49   :  { %v1489_v43 = vpop.f32.mrb[22].mxu1 }
 0xe4a   :  { %v1493_v35 = vmul.f32 0.17677669, %v1489_v43  ;;  %v1951_v44 = vpop.f32.mrb[23].mxu1 }
 0xe4c   :  { %v1494_v46 = vsel %vm235_vm2, %v1493_v35, -inf }
 0xe4d   :  { %1495 = vmax.xlane.f32.xlu1 %v1494_v46 }
 0xeda   :  { %v1496_v47 = vpop.xlane.xlu1 %1495 }
 0xedb   :  { %v1497_v37 = vsub.f32 %v1493_v35, %v1496_v47 }
 0xedd   :  { %v1498_v48 = vmul.f32 1.442695, %v1497_v37 }
 0xedf   :  { %2066 = vpow2.f32 %v1498_v48 }
 0xee9   :  { %v2067_v50 = vpop.eup %2066 }
 0xeea   :  { %v1500_v51 = vsel %vm235_vm2, %v2067_v50, 0.0 }
 0xeeb   :  { %1501 = vadd.xlane.f32.xlu0 %v1500_v51 }
 0xf78   :  { %v1502_v6 = vpop.xlane.xlu0 %1501 }
 0xf79   :  { %2068 = vrcp.f32 %v1502_v6 }
 0xf83   :  { %v2069_v52 = vpop.eup %2068 }
 0xf84   :  { %v1504_v40 = vmul.f32 %v2069_v52, %v2067_v50 }
 0xf86   :  { %1955 = vmatmul.mubr.msk.f32.vlgmr.msra.gmra.mrb[24].mxu1 %vm235_vm2, %v1504_v40 }
0x1059   :  { %v1574_v53 = vpop.f32.mrb[24].mxu1 }
0x105a   :  { %v1956_v54 = vpop.f32.mrb[25].mxu1  ;;  %1966 = vmatmul.mubr.msk.f32.vlgmr.msra.gmra.mrb[10].mxu0 %vm156_vm1, %v1574_v53 }
0x112d   :  { %v1658_v55 = vpop.f32.mrb[10].mxu0 }
0x112e   :  { %v1659_v56 = vadd.f32 %v2436_v1, %v1658_v55  ;;  %v1967_v57 = vpop.f32.mrb[11].mxu0 }
0x1130   :  { %v1662_v58 = vadd.f32 %v1659_v56, %v1170_v34 }
0x1132   :  { %1699 = vst.msk [vmem:[%s2505_s16 + $0x8] sm:$0xff] %vm156_vm1, %v1662_v58 }

</bundles_post_ra>
